<compile_context>
chip_gen: v7x
topology: tpu7x:2x2x1
jax: 0.10.0
libtpu: 0.0.40
codegen_flags: <defaults>
</compile_context>

<pallas_src>
import functools

import jax
import jax.numpy as jnp
from jax import lax
from jax.experimental import pallas as pl
from jax.experimental.pallas import tpu as pltpu


# ----------------------------------------------------------------------------
# Static tap tables: per phase, a tuple of (dy, dx, weight_row).
# ----------------------------------------------------------------------------
# Plain 3x3 / stride-1 conv: one phase, 9 taps, weights = w.reshape(9, Ci, Co).
_TAPS_3X3 = (
    tuple((ky, kx, ky * 3 + kx) for ky in range(3) for kx in range(3)),
)

# Nearest-x2 upsample followed by 3x3/stride-1 conv (ResizeConv2d), written as a
# sub-pixel conv: output pixel (2a+pi, 2b+pj) = 2x2 conv over the zero-padded
# *low-res* input at offsets (a+pi+{0,1}, b+pj+{0,1}) with phase-combined weights.
_TAPS_UP2 = tuple(
    tuple((pi + u, pj + v, (pi * 2 + pj) * 4 + u * 2 + v)
          for u in range(2) for v in range(2))
    for pi in range(2) for pj in range(2)
)


def _w_flat_3x3(w):
    """(3,3,Ci,Co) -> (9,Ci,Co); row index = ky*3 + kx."""
    return w.reshape(9, w.shape[2], w.shape[3])


def _w_flat_up2(w):
    """(3,3,Ci,Co) -> (16,Ci,Co) phase-combined sub-pixel weights.

    Row combos (same for columns): phase 0 -> [w0, w1+w2], phase 1 -> [w0+w1, w2].
    Row index = (pi*2+pj)*4 + u*2 + v.  Exact (adds only).
    """
    rows = (jnp.stack([w[0], w[1] + w[2]], axis=0),
            jnp.stack([w[0] + w[1], w[2]], axis=0))               # each (2,3,Ci,Co)
    parts = []
    for pi in range(2):
        b = rows[pi]
        cols = (jnp.stack([b[:, 0], b[:, 1] + b[:, 2]], axis=1),
                jnp.stack([b[:, 0] + b[:, 1], b[:, 2]], axis=1))  # each (2,2,Ci,Co)
        for pj in range(2):
            parts.append(cols[pj].reshape(4, w.shape[2], w.shape[3]))
    return jnp.concatenate(parts, axis=0)                          # (16, Ci, Co)


# ----------------------------------------------------------------------------
# Fused conv kernel: input affine/relu + in-VMEM padding + conv + BN-stats.
# ----------------------------------------------------------------------------
def _make_conv_kernel(H, W, phase_taps, has_affine, in_relu):
    n_phases = len(phase_taps)

    def kernel(*refs):
        if has_affine:
            x_ref, scale_ref, shift_ref, w_ref, y_ref, ssum_ref, ssq_ref, xpad = refs
        else:
            x_ref, w_ref, y_ref, ssum_ref, ssq_ref, xpad = refs
            scale_ref = shift_ref = None

        cout = y_ref.shape[-1]
        x = x_ref[0]                                        # (H, W, Cin) f32
        if has_affine:
            x = x * scale_ref[...] + shift_ref[...]         # folded upstream BN
            if in_relu:
                x = jnp.maximum(x, 0.0)

        # Zero-pad in VMEM (no HBM pad pass): border stays 0, interior overwritten.
        xpad[...] = jnp.zeros_like(xpad)
        xpad[pl.ds(1, H), pl.ds(1, W), :] = x

        ssum = jnp.zeros((1, 1, cout), jnp.float32)
        ssq = jnp.zeros((1, 1, cout), jnp.float32)
        for p, taps in enumerate(phase_taps):
            acc = jnp.zeros((H, W, cout), jnp.float32)
            for (dy, dx, t) in taps:
                patch = xpad[pl.ds(dy, H), pl.ds(dx, W), :]          # (H, W, Cin)
                acc = acc + lax.dot_general(
                    patch, w_ref[t],
                    dimension_numbers=(((2,), (0,)), ((), ())),
                    preferred_element_type=jnp.float32)
            if n_phases == 1:
                y_ref[0] = acc.astype(y_ref.dtype)
            else:
                y_ref[0, p] = acc.astype(y_ref.dtype)
            # Fused BatchNorm-statistics epilogue (data already resident in vregs).
            ssum = ssum + jnp.sum(acc, axis=(0, 1), keepdims=True)
            ssq = ssq + jnp.sum(acc * acc, axis=(0, 1), keepdims=True)
        ssum_ref[...] = ssum
        ssq_ref[...] = ssq

    return kernel


def conv3x3_fused(x, w_flat, phase_taps, in_scale=None, in_shift=None, in_relu=False):
    """3x3 conv (1 phase) or fused nearest-x2-upsample conv (4 phases).

    Returns (y, ssum, ssq):
      y:    (N, H, W, Cout)        if 1 phase
            (N, 4, H, W, Cout)     otherwise; phase p = pi*2+pj -> out pixel (2a+pi, 2b+pj)
      ssum: (N, 1, Cout)  per-image channel sums (for BatchNorm statistics)
      ssq : (N, 1, Cout)  per-image channel sums of squares
    """
    N, H, W, Cin = x.shape
    T, _, Cout = w_flat.shape
    P = len(phase_taps)
    has_affine = in_scale is not None

    kernel = _make_conv_kernel(H, W, phase_taps, has_affine, in_relu)

    y_shape = (N, H, W, Cout) if P == 1 else (N, P, H, W, Cout)
    y_rank = len(y_shape)

    x_spec = pl.BlockSpec((1, H, W, Cin), lambda n: (n, 0, 0, 0))
    w_spec = pl.BlockSpec((T, Cin, Cout), lambda n: (0, 0, 0))
    y_spec = pl.BlockSpec((1,) + y_shape[1:], lambda n: (n,) + (0,) * (y_rank - 1))
    stat_spec = pl.BlockSpec((1, 1, Cout), lambda n: (n, 0, 0))

    in_specs = [x_spec]
    args = [x.astype(jnp.float32)]
    if has_affine:
        chan_spec = pl.BlockSpec((1, 1, Cin), lambda n: (0, 0, 0))
        in_specs += [chan_spec, chan_spec]
        args += [in_scale.reshape(1, 1, Cin).astype(jnp.float32),
                 in_shift.reshape(1, 1, Cin).astype(jnp.float32)]
    in_specs.append(w_spec)
    args.append(w_flat.astype(jnp.float32))

    y, ssum, ssq = pl.pallas_call(
        kernel,
        out_shape=(jax.ShapeDtypeStruct(y_shape, jnp.float32),
                   jax.ShapeDtypeStruct((N, 1, Cout), jnp.float32),
                   jax.ShapeDtypeStruct((N, 1, Cout), jnp.float32)),
        grid_spec=pltpu.PrefetchScalarGridSpec(
            num_scalar_prefetch=0,
            grid=(N,),
            in_specs=in_specs,
            out_specs=(y_spec, stat_spec, stat_spec),
            scratch_shapes=[pltpu.VMEM((H + 2, W + 2, Cin), jnp.float32)]),
        compiler_params=pltpu.CompilerParams(dimension_semantics=("parallel",)),
    )(*args)
    return y, ssum, ssq


# ----------------------------------------------------------------------------
# Fused tail: relu(a*sa + b*sb + shift), per-channel sa/sb/shift.
# ----------------------------------------------------------------------------
def _combine_kernel(a_ref, b_ref, sa_ref, sb_ref, sh_ref, o_ref):
    o_ref[...] = jnp.maximum(
        a_ref[...] * sa_ref[...] + b_ref[...] * sb_ref[...] + sh_ref[...], 0.0)


def fused_affine_combine(a, sa, b, sb, shift):
    shape = a.shape
    N, C = shape[0], shape[-1]
    rank = a.ndim

    def chan(v):
        return v.reshape((1,) * (rank - 1) + (C,)).astype(jnp.float32)

    full = pl.BlockSpec((1,) + shape[1:], lambda n: (n,) + (0,) * (rank - 1))
    chan_spec = pl.BlockSpec((1,) * (rank - 1) + (C,), lambda n: (0,) * rank)
    return pl.pallas_call(
        _combine_kernel,
        out_shape=jax.ShapeDtypeStruct(shape, jnp.float32),
        grid_spec=pltpu.PrefetchScalarGridSpec(
            num_scalar_prefetch=0,
            grid=(N,),
            in_specs=[full, full, chan_spec, chan_spec, chan_spec],
            out_specs=full),
        compiler_params=pltpu.CompilerParams(dimension_semantics=("parallel",)),
    )(a.astype(jnp.float32), b.astype(jnp.float32), chan(sa), chan(sb), chan(shift))


def _bn_finalize(ssum, ssq, count, gamma, beta, eps=1e-5):
    """Fold training-mode BatchNorm (batch stats, biased variance) into scale/shift."""
    s = jnp.sum(ssum, axis=(0, 1))
    q = jnp.sum(ssq, axis=(0, 1))
    mean = s / count
    var = q / count - mean * mean
    scale = gamma / jnp.sqrt(var + eps)
    shift = beta - mean * scale
    return scale, shift


# ----------------------------------------------------------------------------
# BasicBlockDec forward (Pallas)
# ----------------------------------------------------------------------------
@functools.partial(jax.jit, static_argnames=("stride",))
def basic_block_dec_forward(params, x_nchw, stride=1):
    if stride not in (1, 2):
        # TODO(synk): only the decoder's nearest x2 upsample (stride==2) is implemented.
        raise NotImplementedError("stride must be 1 or 2")

    x = jnp.transpose(x_nchw, (0, 2, 3, 1)).astype(jnp.float32)   # NCHW -> NHWC
    N, H, W, Cin = x.shape

    # conv2 (3x3, no bias) with fused BN-statistics epilogue.
    y2, s2s, s2q = conv3x3_fused(x, _w_flat_3x3(params["conv2_w"]), _TAPS_3X3)
    scale2, shift2 = _bn_finalize(s2s, s2q, N * H * W,
                                  params["bn2_gamma"], params["bn2_beta"])

    Cout = params["conv1_w"].shape[-1]
    if stride == 1:
        # conv1 consumes relu(bn2(y2)); the affine + relu is fused into conv1's input.
        y1, s1s, s1q = conv3x3_fused(y2, _w_flat_3x3(params["conv1_w"]), _TAPS_3X3,
                                     in_scale=scale2, in_shift=shift2, in_relu=True)
        scale1, shift1 = _bn_finalize(s1s, s1q, N * H * W,
                                      params["bn1_gamma"], params["bn1_beta"])
        # out = relu(bn1(y1) + x)
        out = fused_affine_combine(y1, scale1, x,
                                   jnp.ones((Cout,), jnp.float32), shift1)
        return jnp.transpose(out, (0, 3, 1, 2))                   # NHWC -> NCHW

    # stride == 2: both ResizeConv2d branches as sub-pixel phase convolutions.
    # conv1_b / sc_conv_b are dropped (cancelled by the training-mode BN that follows).
    y1, s1s, s1q = conv3x3_fused(y2, _w_flat_up2(params["conv1_w"]), _TAPS_UP2,
                                 in_scale=scale2, in_shift=shift2, in_relu=True)
    scale1, shift1 = _bn_finalize(s1s, s1q, N * (2 * H) * (2 * W),
                                  params["bn1_gamma"], params["bn1_beta"])

    ysc, scs, scq = conv3x3_fused(x, _w_flat_up2(params["sc_conv_w"]), _TAPS_UP2)
    scalesc, shiftsc = _bn_finalize(scs, scq, N * (2 * H) * (2 * W),
                                    params["sc_bn_gamma"], params["sc_bn_beta"])

    # out = relu(bn1(y1) + bn_sc(ysc)), done entirely in phase layout (N,4,H,W,Co).
    out_ph = fused_affine_combine(y1, scale1, ysc, scalesc, shift1 + shiftsc)

    # Phase reassembly fused into the final NHWC->NCHW transpose:
    #   out[n, c, 2a+pi, 2b+pj] = out_ph[n, pi*2+pj, a, b, c]
    out_ph = out_ph.reshape(N, 2, 2, H, W, Cout)
    out = jnp.transpose(out_ph, (0, 5, 3, 1, 4, 2)).reshape(N, Cout, 2 * H, 2 * W)
    return out


# ----------------------------------------------------------------------------
# Pure-JAX reference (correctness check only; keeps the conv biases).
# ----------------------------------------------------------------------------
def nearest_upsample(x, factor):
    return jnp.repeat(jnp.repeat(x, factor, axis=1), factor, axis=2)


def _conv_ref(x, w, bias=None):
    out = lax.conv_general_dilated(
        x, w, window_strides=(1, 1), padding=((1, 1), (1, 1)),
        dimension_numbers=("NHWC", "HWIO", "NHWC"),
        precision=lax.Precision.HIGHEST)
    if bias is not None:
        out = out + bias.reshape(1, 1, 1, -1)
    return out


def _bn_ref(y, gamma, beta, eps=1e-5):
    mean = jnp.mean(y, axis=(0, 1, 2), keepdims=True)
    var = jnp.mean((y - mean) ** 2, axis=(0, 1, 2), keepdims=True)
    return (y - mean) / jnp.sqrt(var + eps) * gamma.reshape(1, 1, 1, -1) \
        + beta.reshape(1, 1, 1, -1)


def _forward_ref(params, x_nchw, stride):
    x = jnp.transpose(x_nchw, (0, 2, 3, 1)).astype(jnp.float32)
    out = jnp.maximum(_bn_ref(_conv_ref(x, params["conv2_w"]),
                              params["bn2_gamma"], params["bn2_beta"]), 0.0)
    if stride == 1:
        y1 = _conv_ref(out, params["conv1_w"])
        shortcut = x
    else:
        y1 = _conv_ref(nearest_upsample(out, stride), params["conv1_w"], params["conv1_b"])
        ysc = _conv_ref(nearest_upsample(x, stride), params["sc_conv_w"], params["sc_conv_b"])
        shortcut = _bn_ref(ysc, params["sc_bn_gamma"], params["sc_bn_beta"])
    out = jnp.maximum(_bn_ref(y1, params["bn1_gamma"], params["bn1_beta"]) + shortcut, 0.0)
    return jnp.transpose(out, (0, 3, 1, 2))


# ----------------------------------------------------------------------------
# Deterministic parameter init (shapes from BasicBlockDec.__init__)
# ----------------------------------------------------------------------------
def init_params(key, in_planes, stride):
    planes = in_planes // stride
    ks = jax.random.split(key, 5)
    params = {
        "conv2_w": jax.random.normal(ks[0], (3, 3, in_planes, in_planes), jnp.float32) * 0.1,
        "bn2_gamma": jnp.ones((in_planes,), jnp.float32),
        "bn2_beta": jnp.zeros((in_planes,), jnp.float32),
        "conv1_w": jax.random.normal(ks[1], (3, 3, in_planes, planes), jnp.float32) * 0.1,
        "bn1_gamma": jnp.ones((planes,), jnp.float32),
        "bn1_beta": jnp.zeros((planes,), jnp.float32),
    }
    if stride != 1:
        params["conv1_b"] = jax.random.normal(ks[2], (planes,), jnp.float32) * 0.1
        params["sc_conv_w"] = jax.random.normal(ks[3], (3, 3, in_planes, planes), jnp.float32) * 0.1
        params["sc_conv_b"] = jax.random.normal(ks[4], (planes,), jnp.float32) * 0.1
        params["sc_bn_gamma"] = jnp.ones((planes,), jnp.float32)
        params["sc_bn_beta"] = jnp.zeros((planes,), jnp.float32)
    return params


if __name__ == "__main__":
    key = jax.random.PRNGKey(0)
    k_x, k_p1, k_p2 = jax.random.split(key, 3)

    N, C, H, W = 2, 8, 8, 8                     # NCHW input, like the PyTorch module
    x = jax.random.normal(k_x, (N, C, H, W), jnp.float32)

    # stride = 1 path (identity shortcut)
    p1 = init_params(k_p1, in_planes=C, stride=1)
    out1 = jax.block_until_ready(basic_block_dec_forward(p1, x, stride=1))
    ref1 = _forward_ref(p1, x, 1)
    assert out1.shape == (N, C, H, W)
    assert jnp.allclose(out1, ref1, atol=2e-4, rtol=2e-4), \
        float(jnp.max(jnp.abs(out1 - ref1)))

    # stride = 2 path (ResizeConv2d + BN shortcut, nearest upsample x2)
    p2 = init_params(k_p2, in_planes=C, stride=2)
    out2 = jax.block_until_ready(basic_block_dec_forward(p2, x, stride=2))
    ref2 = _forward_ref(p2, x, 2)
    assert out2.shape == (N, C // 2, H * 2, W * 2)
    assert jnp.allclose(out2, ref2, atol=2e-4, rtol=2e-4), \
        float(jnp.max(jnp.abs(out2 - ref2)))

    print("KERNEL_OK")
</pallas_src>

<mosaic_0001>
module attributes {stable_mosaic.version = 11 : i64} {
  func.func @kernel(%arg0: i32, %arg1: memref<1x8x8x8xf32, #tpu.memory_space<vmem>>, %arg2: memref<9x8x8xf32, #tpu.memory_space<vmem>>, %arg3: memref<1x8x8x8xf32, #tpu.memory_space<vmem>>, %arg4: memref<1x1x8xf32, #tpu.memory_space<vmem>>, %arg5: memref<1x1x8xf32, #tpu.memory_space<vmem>>, %arg6: memref<10x10x8xf32, #tpu.memory_space<vmem>>) attributes {dimension_semantics = [#tpu.dimension_semantics<parallel>], iteration_bounds = array<i64: 2>, scalar_prefetch = 0 : i64, scratch_operands = 1 : i64, tpu.core_type = #tpu.core_type<tc>, window_params = [{transform_indices = @transform_0, window_bounds = array<i64: 1, 8, 8, 8>}, {pipeline_mode = #tpu.pipeline_mode<synchronous>, transform_indices = @transform_1, window_bounds = array<i64: 9, 8, 8>}, {transform_indices = @transform_2, window_bounds = array<i64: 1, 8, 8, 8>}, {transform_indices = @transform_3, window_bounds = array<i64: 1, 1, 8>}, {transform_indices = @transform_4, window_bounds = array<i64: 1, 1, 8>}]} {
    %c0 = arith.constant 0 : index
    %c0_0 = arith.constant 0 : index
    %c0_1 = arith.constant 0 : index
    %c0_2 = arith.constant 0 : index
    %0 = vector.load %arg1[%c0, %c0_0, %c0_1, %c0_2] : memref<1x8x8x8xf32, #tpu.memory_space<vmem>>, vector<1x8x8x8xf32>
    %1 = vector.shape_cast %0 : vector<1x8x8x8xf32> to vector<8x8x8xf32>
    %cst = arith.constant 0.000000e+00 : f32
    %2 = vector.broadcast %cst : f32 to vector<10x10x8xf32>
    %c0_3 = arith.constant 0 : index
    %c0_4 = arith.constant 0 : index
    %c0_5 = arith.constant 0 : index
    %3 = vector.load %arg6[%c0_3, %c0_4, %c0_5] : memref<10x10x8xf32, #tpu.memory_space<vmem>>, vector<10x10x8xf32>
    tpu.vector_store %arg6[%c0_3, %c0_4, %c0_5], %2 {strides = array<i32>} : memref<10x10x8xf32, #tpu.memory_space<vmem>>, vector<10x10x8xf32>,
    %c1 = arith.constant 1 : index
    %c1_6 = arith.constant 1 : index
    %c0_7 = arith.constant 0 : index
    %4 = vector.load %arg6[%c1, %c1_6, %c0_7] : memref<10x10x8xf32, #tpu.memory_space<vmem>>, vector<8x8x8xf32>
    tpu.vector_store %arg6[%c1, %c1_6, %c0_7], %1 {strides = array<i32>} : memref<10x10x8xf32, #tpu.memory_space<vmem>>, vector<8x8x8xf32>,
    %cst_8 = arith.constant 0.000000e+00 : f32
    %5 = vector.broadcast %cst_8 : f32 to vector<1x1x8xf32>
    %cst_9 = arith.constant 0.000000e+00 : f32
    %6 = vector.broadcast %cst_9 : f32 to vector<1x1x8xf32>
    %cst_10 = arith.constant 0.000000e+00 : f32
    %7 = vector.broadcast %cst_10 : f32 to vector<8x8x8xf32>
    %c0_11 = arith.constant 0 : index
    %c0_12 = arith.constant 0 : index
    %c0_13 = arith.constant 0 : index
    %8 = vector.load %arg6[%c0_11, %c0_12, %c0_13] : memref<10x10x8xf32, #tpu.memory_space<vmem>>, vector<8x8x8xf32>
    %c0_14 = arith.constant 0 : index
    %c0_15 = arith.constant 0 : index
    %c0_16 = arith.constant 0 : index
    %9 = vector.load %arg2[%c0_14, %c0_15, %c0_16] : memref<9x8x8xf32, #tpu.memory_space<vmem>>, vector<1x8x8xf32>
    %10 = vector.shape_cast %9 : vector<1x8x8xf32> to vector<8x8xf32>
    %cst_17 = arith.constant dense<0.000000e+00> : vector<8x8x8xf32>
    %11 = tpu.matmul %8, %10, %cst_17 {dimension_numbers = #tpu.dot_dimension_numbers<[2], [0], [0, 1], [1], [0, 0, 0, 1, 1, 1], [], []>} : vector<8x8x8xf32>, vector<8x8xf32>, vector<8x8x8xf32> -> vector<8x8x8xf32>
    %12 = arith.addf %7, %11 : vector<8x8x8xf32>
    %c0_18 = arith.constant 0 : index
    %c1_19 = arith.constant 1 : index
    %c0_20 = arith.constant 0 : index
    %13 = vector.load %arg6[%c0_18, %c1_19, %c0_20] : memref<10x10x8xf32, #tpu.memory_space<vmem>>, vector<8x8x8xf32>
    %c1_21 = arith.constant 1 : index
    %c0_22 = arith.constant 0 : index
    %c0_23 = arith.constant 0 : index
    %14 = vector.load %arg2[%c1_21, %c0_22, %c0_23] : memref<9x8x8xf32, #tpu.memory_space<vmem>>, vector<1x8x8xf32>
    %15 = vector.shape_cast %14 : vector<1x8x8xf32> to vector<8x8xf32>
    %cst_24 = arith.constant dense<0.000000e+00> : vector<8x8x8xf32>
    %16 = tpu.matmul %13, %15, %cst_24 {dimension_numbers = #tpu.dot_dimension_numbers<[2], [0], [0, 1], [1], [0, 0, 0, 1, 1, 1], [], []>} : vector<8x8x8xf32>, vector<8x8xf32>, vector<8x8x8xf32> -> vector<8x8x8xf32>
    %17 = arith.addf %12, %16 : vector<8x8x8xf32>
    %c0_25 = arith.constant 0 : index
    %c2 = arith.constant 2 : index
    %c0_26 = arith.constant 0 : index
    %18 = vector.load %arg6[%c0_25, %c2, %c0_26] : memref<10x10x8xf32, #tpu.memory_space<vmem>>, vector<8x8x8xf32>
    %c2_27 = arith.constant 2 : index
    %c0_28 = arith.constant 0 : index
    %c0_29 = arith.constant 0 : index
    %19 = vector.load %arg2[%c2_27, %c0_28, %c0_29] : memref<9x8x8xf32, #tpu.memory_space<vmem>>, vector<1x8x8xf32>
    %20 = vector.shape_cast %19 : vector<1x8x8xf32> to vector<8x8xf32>
    %cst_30 = arith.constant dense<0.000000e+00> : vector<8x8x8xf32>
    %21 = tpu.matmul %18, %20, %cst_30 {dimension_numbers = #tpu.dot_dimension_numbers<[2], [0], [0, 1], [1], [0, 0, 0, 1, 1, 1], [], []>} : vector<8x8x8xf32>, vector<8x8xf32>, vector<8x8x8xf32> -> vector<8x8x8xf32>
    %22 = arith.addf %17, %21 : vector<8x8x8xf32>
    %c1_31 = arith.constant 1 : index
    %c0_32 = arith.constant 0 : index
    %c0_33 = arith.constant 0 : index
    %23 = vector.load %arg6[%c1_31, %c0_32, %c0_33] : memref<10x10x8xf32, #tpu.memory_space<vmem>>, vector<8x8x8xf32>
    %c3 = arith.constant 3 : index
    %c0_34 = arith.constant 0 : index
    %c0_35 = arith.constant 0 : index
    %24 = vector.load %arg2[%c3, %c0_34, %c0_35] : memref<9x8x8xf32, #tpu.memory_space<vmem>>, vector<1x8x8xf32>
    %25 = vector.shape_cast %24 : vector<1x8x8xf32> to vector<8x8xf32>
    %cst_36 = arith.constant dense<0.000000e+00> : vector<8x8x8xf32>
    %26 = tpu.matmul %23, %25, %cst_36 {dimension_numbers = #tpu.dot_dimension_numbers<[2], [0], [0, 1], [1], [0, 0, 0, 1, 1, 1], [], []>} : vector<8x8x8xf32>, vector<8x8xf32>, vector<8x8x8xf32> -> vector<8x8x8xf32>
    %27 = arith.addf %22, %26 : vector<8x8x8xf32>
    %c1_37 = arith.constant 1 : index
    %c1_38 = arith.constant 1 : index
    %c0_39 = arith.constant 0 : index
    %28 = vector.load %arg6[%c1_37, %c1_38, %c0_39] : memref<10x10x8xf32, #tpu.memory_space<vmem>>, vector<8x8x8xf32>
    %c4 = arith.constant 4 : index
    %c0_40 = arith.constant 0 : index
    %c0_41 = arith.constant 0 : index
    %29 = vector.load %arg2[%c4, %c0_40, %c0_41] : memref<9x8x8xf32, #tpu.memory_space<vmem>>, vector<1x8x8xf32>
    %30 = vector.shape_cast %29 : vector<1x8x8xf32> to vector<8x8xf32>
    %cst_42 = arith.constant dense<0.000000e+00> : vector<8x8x8xf32>
    %31 = tpu.matmul %28, %30, %cst_42 {dimension_numbers = #tpu.dot_dimension_numbers<[2], [0], [0, 1], [1], [0, 0, 0, 1, 1, 1], [], []>} : vector<8x8x8xf32>, vector<8x8xf32>, vector<8x8x8xf32> -> vector<8x8x8xf32>
    %32 = arith.addf %27, %31 : vector<8x8x8xf32>
    %c1_43 = arith.constant 1 : index
    %c2_44 = arith.constant 2 : index
    %c0_45 = arith.constant 0 : index
    %33 = vector.load %arg6[%c1_43, %c2_44, %c0_45] : memref<10x10x8xf32, #tpu.memory_space<vmem>>, vector<8x8x8xf32>
    %c5 = arith.constant 5 : index
    %c0_46 = arith.constant 0 : index
    %c0_47 = arith.constant 0 : index
    %34 = vector.load %arg2[%c5, %c0_46, %c0_47] : memref<9x8x8xf32, #tpu.memory_space<vmem>>, vector<1x8x8xf32>
    %35 = vector.shape_cast %34 : vector<1x8x8xf32> to vector<8x8xf32>
    %cst_48 = arith.constant dense<0.000000e+00> : vector<8x8x8xf32>
    %36 = tpu.matmul %33, %35, %cst_48 {dimension_numbers = #tpu.dot_dimension_numbers<[2], [0], [0, 1], [1], [0, 0, 0, 1, 1, 1], [], []>} : vector<8x8x8xf32>, vector<8x8xf32>, vector<8x8x8xf32> -> vector<8x8x8xf32>
    %37 = arith.addf %32, %36 : vector<8x8x8xf32>
    %c2_49 = arith.constant 2 : index
    %c0_50 = arith.constant 0 : index
    %c0_51 = arith.constant 0 : index
    %38 = vector.load %arg6[%c2_49, %c0_50, %c0_51] : memref<10x10x8xf32, #tpu.memory_space<vmem>>, vector<8x8x8xf32>
    %c6 = arith.constant 6 : index
    %c0_52 = arith.constant 0 : index
    %c0_53 = arith.constant 0 : index
    %39 = vector.load %arg2[%c6, %c0_52, %c0_53] : memref<9x8x8xf32, #tpu.memory_space<vmem>>, vector<1x8x8xf32>
    %40 = vector.shape_cast %39 : vector<1x8x8xf32> to vector<8x8xf32>
    %cst_54 = arith.constant dense<0.000000e+00> : vector<8x8x8xf32>
    %41 = tpu.matmul %38, %40, %cst_54 {dimension_numbers = #tpu.dot_dimension_numbers<[2], [0], [0, 1], [1], [0, 0, 0, 1, 1, 1], [], []>} : vector<8x8x8xf32>, vector<8x8xf32>, vector<8x8x8xf32> -> vector<8x8x8xf32>
    %42 = arith.addf %37, %41 : vector<8x8x8xf32>
    %c2_55 = arith.constant 2 : index
    %c1_56 = arith.constant 1 : index
    %c0_57 = arith.constant 0 : index
    %43 = vector.load %arg6[%c2_55, %c1_56, %c0_57] : memref<10x10x8xf32, #tpu.memory_space<vmem>>, vector<8x8x8xf32>
    %c7 = arith.constant 7 : index
    %c0_58 = arith.constant 0 : index
    %c0_59 = arith.constant 0 : index
    %44 = vector.load %arg2[%c7, %c0_58, %c0_59] : memref<9x8x8xf32, #tpu.memory_space<vmem>>, vector<1x8x8xf32>
    %45 = vector.shape_cast %44 : vector<1x8x8xf32> to vector<8x8xf32>
    %cst_60 = arith.constant dense<0.000000e+00> : vector<8x8x8xf32>
    %46 = tpu.matmul %43, %45, %cst_60 {dimension_numbers = #tpu.dot_dimension_numbers<[2], [0], [0, 1], [1], [0, 0, 0, 1, 1, 1], [], []>} : vector<8x8x8xf32>, vector<8x8xf32>, vector<8x8x8xf32> -> vector<8x8x8xf32>
    %47 = arith.addf %42, %46 : vector<8x8x8xf32>
    %c2_61 = arith.constant 2 : index
    %c2_62 = arith.constant 2 : index
    %c0_63 = arith.constant 0 : index
    %48 = vector.load %arg6[%c2_61, %c2_62, %c0_63] : memref<10x10x8xf32, #tpu.memory_space<vmem>>, vector<8x8x8xf32>
    %c8 = arith.constant 8 : index
    %c0_64 = arith.constant 0 : index
    %c0_65 = arith.constant 0 : index
    %49 = vector.load %arg2[%c8, %c0_64, %c0_65] : memref<9x8x8xf32, #tpu.memory_space<vmem>>, vector<1x8x8xf32>
    %50 = vector.shape_cast %49 : vector<1x8x8xf32> to vector<8x8xf32>
    %cst_66 = arith.constant dense<0.000000e+00> : vector<8x8x8xf32>
    %51 = tpu.matmul %48, %50, %cst_66 {dimension_numbers = #tpu.dot_dimension_numbers<[2], [0], [0, 1], [1], [0, 0, 0, 1, 1, 1], [], []>} : vector<8x8x8xf32>, vector<8x8xf32>, vector<8x8x8xf32> -> vector<8x8x8xf32>
    %52 = arith.addf %47, %51 : vector<8x8x8xf32>
    %c0_67 = arith.constant 0 : index
    %c0_68 = arith.constant 0 : index
    %c0_69 = arith.constant 0 : index
    %c0_70 = arith.constant 0 : index
    %53 = vector.load %arg3[%c0_67, %c0_68, %c0_69, %c0_70] : memref<1x8x8x8xf32, #tpu.memory_space<vmem>>, vector<1x8x8x8xf32>
    %54 = vector.shape_cast %53 : vector<1x8x8x8xf32> to vector<8x8x8xf32>
    %55 = vector.shape_cast %52 : vector<8x8x8xf32> to vector<1x8x8x8xf32>
    tpu.vector_store %arg3[%c0_67, %c0_68, %c0_69, %c0_70], %55 {strides = array<i32>} : memref<1x8x8x8xf32, #tpu.memory_space<vmem>>, vector<1x8x8x8xf32>,
    %cst_71 = arith.constant dense<0.000000e+00> : vector<8xf32>
    %56 = vector.multi_reduction <add>, %52, %cst_71 [0, 1] : vector<8x8x8xf32> to vector<8xf32>
    %57 = vector.shape_cast %56 : vector<8xf32> to vector<1x1x8xf32>
    %58 = arith.addf %5, %57 : vector<1x1x8xf32>
    %59 = arith.mulf %52, %52 : vector<8x8x8xf32>
    %cst_72 = arith.constant dense<0.000000e+00> : vector<8xf32>
    %60 = vector.multi_reduction <add>, %59, %cst_72 [0, 1] : vector<8x8x8xf32> to vector<8xf32>
    %61 = vector.shape_cast %60 : vector<8xf32> to vector<1x1x8xf32>
    %62 = arith.addf %6, %61 : vector<1x1x8xf32>
    %c0_73 = arith.constant 0 : index
    %c0_74 = arith.constant 0 : index
    %c0_75 = arith.constant 0 : index
    %63 = vector.load %arg4[%c0_73, %c0_74, %c0_75] : memref<1x1x8xf32, #tpu.memory_space<vmem>>, vector<1x1x8xf32>
    tpu.vector_store %arg4[%c0_73, %c0_74, %c0_75], %58 {strides = array<i32>} : memref<1x1x8xf32, #tpu.memory_space<vmem>>, vector<1x1x8xf32>,
    %c0_76 = arith.constant 0 : index
    %c0_77 = arith.constant 0 : index
    %c0_78 = arith.constant 0 : index
    %64 = vector.load %arg5[%c0_76, %c0_77, %c0_78] : memref<1x1x8xf32, #tpu.memory_space<vmem>>, vector<1x1x8xf32>
    tpu.vector_store %arg5[%c0_76, %c0_77, %c0_78], %62 {strides = array<i32>} : memref<1x1x8xf32, #tpu.memory_space<vmem>>, vector<1x1x8xf32>,
    return
  }
  func.func @transform_0(%arg0: i32) -> (i32, i32, i32, i32) {
    %c0_i32 = arith.constant 0 : i32
    %c0_i32_0 = arith.constant 0 : i32
    %c0_i32_1 = arith.constant 0 : i32
    %c0_i32_2 = arith.constant 0 : i32
    return %arg0, %c0_i32, %c0_i32_0, %c0_i32_1 : i32, i32, i32, i32
  }
  func.func @transform_1(%arg0: i32) -> (i32, i32, i32) {
    %c0_i32 = arith.constant 0 : i32
    %c0_i32_0 = arith.constant 0 : i32
    %c0_i32_1 = arith.constant 0 : i32
    %c0_i32_2 = arith.constant 0 : i32
    return %c0_i32, %c0_i32_0, %c0_i32_1 : i32, i32, i32
  }
  func.func @transform_2(%arg0: i32) -> (i32, i32, i32, i32) {
    %c0_i32 = arith.constant 0 : i32
    %c0_i32_0 = arith.constant 0 : i32
    %c0_i32_1 = arith.constant 0 : i32
    %c0_i32_2 = arith.constant 0 : i32
    return %arg0, %c0_i32, %c0_i32_0, %c0_i32_1 : i32, i32, i32, i32
  }
  func.func @transform_3(%arg0: i32) -> (i32, i32, i32) {
    %c0_i32 = arith.constant 0 : i32
    %c0_i32_0 = arith.constant 0 : i32
    %c0_i32_1 = arith.constant 0 : i32
    return %arg0, %c0_i32, %c0_i32_0 : i32, i32, i32
  }
  func.func @transform_4(%arg0: i32) -> (i32, i32, i32) {
    %c0_i32 = arith.constant 0 : i32
    %c0_i32_0 = arith.constant 0 : i32
    %c0_i32_1 = arith.constant 0 : i32
    return %arg0, %c0_i32, %c0_i32_0 : i32, i32, i32
  }
}

module attributes {stable_mosaic.version = 11 : i64} {
  func.func @kernel(%arg0: i32, %arg1: memref<1x8x8x8xf32, #tpu.memory_space<vmem>>, %arg2: memref<1x1x8xf32, #tpu.memory_space<vmem>>, %arg3: memref<1x1x8xf32, #tpu.memory_space<vmem>>, %arg4: memref<9x8x8xf32, #tpu.memory_space<vmem>>, %arg5: memref<1x8x8x8xf32, #tpu.memory_space<vmem>>, %arg6: memref<1x1x8xf32, #tpu.memory_space<vmem>>, %arg7: memref<1x1x8xf32, #tpu.memory_space<vmem>>, %arg8: memref<10x10x8xf32, #tpu.memory_space<vmem>>) attributes {dimension_semantics = [#tpu.dimension_semantics<parallel>], iteration_bounds = array<i64: 2>, scalar_prefetch = 0 : i64, scratch_operands = 1 : i64, tpu.core_type = #tpu.core_type<tc>, window_params = [{transform_indices = @transform_0, window_bounds = array<i64: 1, 8, 8, 8>}, {pipeline_mode = #tpu.pipeline_mode<synchronous>, transform_indices = @transform_1, window_bounds = array<i64: 1, 1, 8>}, {pipeline_mode = #tpu.pipeline_mode<synchronous>, transform_indices = @transform_2, window_bounds = array<i64: 1, 1, 8>}, {pipeline_mode = #tpu.pipeline_mode<synchronous>, transform_indices = @transform_3, window_bounds = array<i64: 9, 8, 8>}, {transform_indices = @transform_4, window_bounds = array<i64: 1, 8, 8, 8>}, {transform_indices = @transform_5, window_bounds = array<i64: 1, 1, 8>}, {transform_indices = @transform_6, window_bounds = array<i64: 1, 1, 8>}]} {
    %c0 = arith.constant 0 : index
    %c0_0 = arith.constant 0 : index
    %c0_1 = arith.constant 0 : index
    %c0_2 = arith.constant 0 : index
    %0 = vector.load %arg1[%c0, %c0_0, %c0_1, %c0_2] : memref<1x8x8x8xf32, #tpu.memory_space<vmem>>, vector<1x8x8x8xf32>
    %1 = vector.shape_cast %0 : vector<1x8x8x8xf32> to vector<8x8x8xf32>
    %c0_3 = arith.constant 0 : index
    %c0_4 = arith.constant 0 : index
    %c0_5 = arith.constant 0 : index
    %2 = vector.load %arg2[%c0_3, %c0_4, %c0_5] : memref<1x1x8xf32, #tpu.memory_space<vmem>>, vector<1x1x8xf32>
    %3 = vector.broadcast %2 : vector<1x1x8xf32> to vector<8x8x8xf32>
    %4 = arith.mulf %1, %3 : vector<8x8x8xf32>
    %c0_6 = arith.constant 0 : index
    %c0_7 = arith.constant 0 : index
    %c0_8 = arith.constant 0 : index
    %5 = vector.load %arg3[%c0_6, %c0_7, %c0_8] : memref<1x1x8xf32, #tpu.memory_space<vmem>>, vector<1x1x8xf32>
    %6 = vector.broadcast %5 : vector<1x1x8xf32> to vector<8x8x8xf32>
    %7 = arith.addf %4, %6 : vector<8x8x8xf32>
    %cst = arith.constant 0.000000e+00 : f32
    %8 = vector.broadcast %cst : f32 to vector<8x8x8xf32>
    %9 = arith.maximumf %7, %8 : vector<8x8x8xf32>
    %cst_9 = arith.constant 0.000000e+00 : f32
    %10 = vector.broadcast %cst_9 : f32 to vector<10x10x8xf32>
    %c0_10 = arith.constant 0 : index
    %c0_11 = arith.constant 0 : index
    %c0_12 = arith.constant 0 : index
    %11 = vector.load %arg8[%c0_10, %c0_11, %c0_12] : memref<10x10x8xf32, #tpu.memory_space<vmem>>, vector<10x10x8xf32>
    tpu.vector_store %arg8[%c0_10, %c0_11, %c0_12], %10 {strides = array<i32>} : memref<10x10x8xf32, #tpu.memory_space<vmem>>, vector<10x10x8xf32>,
    %c1 = arith.constant 1 : index
    %c1_13 = arith.constant 1 : index
    %c0_14 = arith.constant 0 : index
    %12 = vector.load %arg8[%c1, %c1_13, %c0_14] : memref<10x10x8xf32, #tpu.memory_space<vmem>>, vector<8x8x8xf32>
    tpu.vector_store %arg8[%c1, %c1_13, %c0_14], %9 {strides = array<i32>} : memref<10x10x8xf32, #tpu.memory_space<vmem>>, vector<8x8x8xf32>,
    %cst_15 = arith.constant 0.000000e+00 : f32
    %13 = vector.broadcast %cst_15 : f32 to vector<1x1x8xf32>
    %cst_16 = arith.constant 0.000000e+00 : f32
    %14 = vector.broadcast %cst_16 : f32 to vector<1x1x8xf32>
    %cst_17 = arith.constant 0.000000e+00 : f32
    %15 = vector.broadcast %cst_17 : f32 to vector<8x8x8xf32>
    %c0_18 = arith.constant 0 : index
    %c0_19 = arith.constant 0 : index
    %c0_20 = arith.constant 0 : index
    %16 = vector.load %arg8[%c0_18, %c0_19, %c0_20] : memref<10x10x8xf32, #tpu.memory_space<vmem>>, vector<8x8x8xf32>
    %c0_21 = arith.constant 0 : index
    %c0_22 = arith.constant 0 : index
    %c0_23 = arith.constant 0 : index
    %17 = vector.load %arg4[%c0_21, %c0_22, %c0_23] : memref<9x8x8xf32, #tpu.memory_space<vmem>>, vector<1x8x8xf32>
    %18 = vector.shape_cast %17 : vector<1x8x8xf32> to vector<8x8xf32>
    %cst_24 = arith.constant dense<0.000000e+00> : vector<8x8x8xf32>
    %19 = tpu.matmul %16, %18, %cst_24 {dimension_numbers = #tpu.dot_dimension_numbers<[2], [0], [0, 1], [1], [0, 0, 0, 1, 1, 1], [], []>} : vector<8x8x8xf32>, vector<8x8xf32>, vector<8x8x8xf32> -> vector<8x8x8xf32>
    %20 = arith.addf %15, %19 : vector<8x8x8xf32>
    %c0_25 = arith.constant 0 : index
    %c1_26 = arith.constant 1 : index
    %c0_27 = arith.constant 0 : index
    %21 = vector.load %arg8[%c0_25, %c1_26, %c0_27] : memref<10x10x8xf32, #tpu.memory_space<vmem>>, vector<8x8x8xf32>
    %c1_28 = arith.constant 1 : index
    %c0_29 = arith.constant 0 : index
    %c0_30 = arith.constant 0 : index
    %22 = vector.load %arg4[%c1_28, %c0_29, %c0_30] : memref<9x8x8xf32, #tpu.memory_space<vmem>>, vector<1x8x8xf32>
    %23 = vector.shape_cast %22 : vector<1x8x8xf32> to vector<8x8xf32>
    %cst_31 = arith.constant dense<0.000000e+00> : vector<8x8x8xf32>
    %24 = tpu.matmul %21, %23, %cst_31 {dimension_numbers = #tpu.dot_dimension_numbers<[2], [0], [0, 1], [1], [0, 0, 0, 1, 1, 1], [], []>} : vector<8x8x8xf32>, vector<8x8xf32>, vector<8x8x8xf32> -> vector<8x8x8xf32>
    %25 = arith.addf %20, %24 : vector<8x8x8xf32>
    %c0_32 = arith.constant 0 : index
    %c2 = arith.constant 2 : index
    %c0_33 = arith.constant 0 : index
    %26 = vector.load %arg8[%c0_32, %c2, %c0_33] : memref<10x10x8xf32, #tpu.memory_space<vmem>>, vector<8x8x8xf32>
    %c2_34 = arith.constant 2 : index
    %c0_35 = arith.constant 0 : index
    %c0_36 = arith.constant 0 : index
    %27 = vector.load %arg4[%c2_34, %c0_35, %c0_36] : memref<9x8x8xf32, #tpu.memory_space<vmem>>, vector<1x8x8xf32>
    %28 = vector.shape_cast %27 : vector<1x8x8xf32> to vector<8x8xf32>
    %cst_37 = arith.constant dense<0.000000e+00> : vector<8x8x8xf32>
    %29 = tpu.matmul %26, %28, %cst_37 {dimension_numbers = #tpu.dot_dimension_numbers<[2], [0], [0, 1], [1], [0, 0, 0, 1, 1, 1], [], []>} : vector<8x8x8xf32>, vector<8x8xf32>, vector<8x8x8xf32> -> vector<8x8x8xf32>
    %30 = arith.addf %25, %29 : vector<8x8x8xf32>
    %c1_38 = arith.constant 1 : index
    %c0_39 = arith.constant 0 : index
    %c0_40 = arith.constant 0 : index
    %31 = vector.load %arg8[%c1_38, %c0_39, %c0_40] : memref<10x10x8xf32, #tpu.memory_space<vmem>>, vector<8x8x8xf32>
    %c3 = arith.constant 3 : index
    %c0_41 = arith.constant 0 : index
    %c0_42 = arith.constant 0 : index
    %32 = vector.load %arg4[%c3, %c0_41, %c0_42] : memref<9x8x8xf32, #tpu.memory_space<vmem>>, vector<1x8x8xf32>
    %33 = vector.shape_cast %32 : vector<1x8x8xf32> to vector<8x8xf32>
    %cst_43 = arith.constant dense<0.000000e+00> : vector<8x8x8xf32>
    %34 = tpu.matmul %31, %33, %cst_43 {dimension_numbers = #tpu.dot_dimension_numbers<[2], [0], [0, 1], [1], [0, 0, 0, 1, 1, 1], [], []>} : vector<8x8x8xf32>, vector<8x8xf32>, vector<8x8x8xf32> -> vector<8x8x8xf32>
    %35 = arith.addf %30, %34 : vector<8x8x8xf32>
    %c1_44 = arith.constant 1 : index
    %c1_45 = arith.constant 1 : index
    %c0_46 = arith.constant 0 : index
    %36 = vector.load %arg8[%c1_44, %c1_45, %c0_46] : memref<10x10x8xf32, #tpu.memory_space<vmem>>, vector<8x8x8xf32>
    %c4 = arith.constant 4 : index
    %c0_47 = arith.constant 0 : index
    %c0_48 = arith.constant 0 : index
    %37 = vector.load %arg4[%c4, %c0_47, %c0_48] : memref<9x8x8xf32, #tpu.memory_space<vmem>>, vector<1x8x8xf32>
    %38 = vector.shape_cast %37 : vector<1x8x8xf32> to vector<8x8xf32>
    %cst_49 = arith.constant dense<0.000000e+00> : vector<8x8x8xf32>
    %39 = tpu.matmul %36, %38, %cst_49 {dimension_numbers = #tpu.dot_dimension_numbers<[2], [0], [0, 1], [1], [0, 0, 0, 1, 1, 1], [], []>} : vector<8x8x8xf32>, vector<8x8xf32>, vector<8x8x8xf32> -> vector<8x8x8xf32>
    %40 = arith.addf %35, %39 : vector<8x8x8xf32>
    %c1_50 = arith.constant 1 : index
    %c2_51 = arith.constant 2 : index
    %c0_52 = arith.constant 0 : index
    %41 = vector.load %arg8[%c1_50, %c2_51, %c0_52] : memref<10x10x8xf32, #tpu.memory_space<vmem>>, vector<8x8x8xf32>
    %c5 = arith.constant 5 : index
    %c0_53 = arith.constant 0 : index
    %c0_54 = arith.constant 0 : index
    %42 = vector.load %arg4[%c5, %c0_53, %c0_54] : memref<9x8x8xf32, #tpu.memory_space<vmem>>, vector<1x8x8xf32>
    %43 = vector.shape_cast %42 : vector<1x8x8xf32> to vector<8x8xf32>
    %cst_55 = arith.constant dense<0.000000e+00> : vector<8x8x8xf32>
    %44 = tpu.matmul %41, %43, %cst_55 {dimension_numbers = #tpu.dot_dimension_numbers<[2], [0], [0, 1], [1], [0, 0, 0, 1, 1, 1], [], []>} : vector<8x8x8xf32>, vector<8x8xf32>, vector<8x8x8xf32> -> vector<8x8x8xf32>
    %45 = arith.addf %40, %44 : vector<8x8x8xf32>
    %c2_56 = arith.constant 2 : index
    %c0_57 = arith.constant 0 : index
    %c0_58 = arith.constant 0 : index
    %46 = vector.load %arg8[%c2_56, %c0_57, %c0_58] : memref<10x10x8xf32, #tpu.memory_space<vmem>>, vector<8x8x8xf32>
    %c6 = arith.constant 6 : index
    %c0_59 = arith.constant 0 : index
    %c0_60 = arith.constant 0 : index
    %47 = vector.load %arg4[%c6, %c0_59, %c0_60] : memref<9x8x8xf32, #tpu.memory_space<vmem>>, vector<1x8x8xf32>
    %48 = vector.shape_cast %47 : vector<1x8x8xf32> to vector<8x8xf32>
    %cst_61 = arith.constant dense<0.000000e+00> : vector<8x8x8xf32>
    %49 = tpu.matmul %46, %48, %cst_61 {dimension_numbers = #tpu.dot_dimension_numbers<[2], [0], [0, 1], [1], [0, 0, 0, 1, 1, 1], [], []>} : vector<8x8x8xf32>, vector<8x8xf32>, vector<8x8x8xf32> -> vector<8x8x8xf32>
    %50 = arith.addf %45, %49 : vector<8x8x8xf32>
    %c2_62 = arith.constant 2 : index
    %c1_63 = arith.constant 1 : index
    %c0_64 = arith.constant 0 : index
    %51 = vector.load %arg8[%c2_62, %c1_63, %c0_64] : memref<10x10x8xf32, #tpu.memory_space<vmem>>, vector<8x8x8xf32>
    %c7 = arith.constant 7 : index
    %c0_65 = arith.constant 0 : index
    %c0_66 = arith.constant 0 : index
    %52 = vector.load %arg4[%c7, %c0_65, %c0_66] : memref<9x8x8xf32, #tpu.memory_space<vmem>>, vector<1x8x8xf32>
    %53 = vector.shape_cast %52 : vector<1x8x8xf32> to vector<8x8xf32>
    %cst_67 = arith.constant dense<0.000000e+00> : vector<8x8x8xf32>
    %54 = tpu.matmul %51, %53, %cst_67 {dimension_numbers = #tpu.dot_dimension_numbers<[2], [0], [0, 1], [1], [0, 0, 0, 1, 1, 1], [], []>} : vector<8x8x8xf32>, vector<8x8xf32>, vector<8x8x8xf32> -> vector<8x8x8xf32>
    %55 = arith.addf %50, %54 : vector<8x8x8xf32>
    %c2_68 = arith.constant 2 : index
    %c2_69 = arith.constant 2 : index
    %c0_70 = arith.constant 0 : index
    %56 = vector.load %arg8[%c2_68, %c2_69, %c0_70] : memref<10x10x8xf32, #tpu.memory_space<vmem>>, vector<8x8x8xf32>
    %c8 = arith.constant 8 : index
    %c0_71 = arith.constant 0 : index
    %c0_72 = arith.constant 0 : index
    %57 = vector.load %arg4[%c8, %c0_71, %c0_72] : memref<9x8x8xf32, #tpu.memory_space<vmem>>, vector<1x8x8xf32>
    %58 = vector.shape_cast %57 : vector<1x8x8xf32> to vector<8x8xf32>
    %cst_73 = arith.constant dense<0.000000e+00> : vector<8x8x8xf32>
    %59 = tpu.matmul %56, %58, %cst_73 {dimension_numbers = #tpu.dot_dimension_numbers<[2], [0], [0, 1], [1], [0, 0, 0, 1, 1, 1], [], []>} : vector<8x8x8xf32>, vector<8x8xf32>, vector<8x8x8xf32> -> vector<8x8x8xf32>
    %60 = arith.addf %55, %59 : vector<8x8x8xf32>
    %c0_74 = arith.constant 0 : index
    %c0_75 = arith.constant 0 : index
    %c0_76 = arith.constant 0 : index
    %c0_77 = arith.constant 0 : index
    %61 = vector.load %arg5[%c0_74, %c0_75, %c0_76, %c0_77] : memref<1x8x8x8xf32, #tpu.memory_space<vmem>>, vector<1x8x8x8xf32>
    %62 = vector.shape_cast %61 : vector<1x8x8x8xf32> to vector<8x8x8xf32>
    %63 = vector.shape_cast %60 : vector<8x8x8xf32> to vector<1x8x8x8xf32>
    tpu.vector_store %arg5[%c0_74, %c0_75, %c0_76, %c0_77], %63 {strides = array<i32>} : memref<1x8x8x8xf32, #tpu.memory_space<vmem>>, vector<1x8x8x8xf32>,
    %cst_78 = arith.constant dense<0.000000e+00> : vector<8xf32>
    %64 = vector.multi_reduction <add>, %60, %cst_78 [0, 1] : vector<8x8x8xf32> to vector<8xf32>
    %65 = vector.shape_cast %64 : vector<8xf32> to vector<1x1x8xf32>
    %66 = arith.addf %13, %65 : vector<1x1x8xf32>
    %67 = arith.mulf %60, %60 : vector<8x8x8xf32>
    %cst_79 = arith.constant dense<0.000000e+00> : vector<8xf32>
    %68 = vector.multi_reduction <add>, %67, %cst_79 [0, 1] : vector<8x8x8xf32> to vector<8xf32>
    %69 = vector.shape_cast %68 : vector<8xf32> to vector<1x1x8xf32>
    %70 = arith.addf %14, %69 : vector<1x1x8xf32>
    %c0_80 = arith.constant 0 : index
    %c0_81 = arith.constant 0 : index
    %c0_82 = arith.constant 0 : index
    %71 = vector.load %arg6[%c0_80, %c0_81, %c0_82] : memref<1x1x8xf32, #tpu.memory_space<vmem>>, vector<1x1x8xf32>
    tpu.vector_store %arg6[%c0_80, %c0_81, %c0_82], %66 {strides = array<i32>} : memref<1x1x8xf32, #tpu.memory_space<vmem>>, vector<1x1x8xf32>,
    %c0_83 = arith.constant 0 : index
    %c0_84 = arith.constant 0 : index
    %c0_85 = arith.constant 0 : index
    %72 = vector.load %arg7[%c0_83, %c0_84, %c0_85] : memref<1x1x8xf32, #tpu.memory_space<vmem>>, vector<1x1x8xf32>
    tpu.vector_store %arg7[%c0_83, %c0_84, %c0_85], %70 {strides = array<i32>} : memref<1x1x8xf32, #tpu.memory_space<vmem>>, vector<1x1x8xf32>,
    return
  }
  func.func @transform_0(%arg0: i32) -> (i32, i32, i32, i32) {
    %c0_i32 = arith.constant 0 : i32
    %c0_i32_0 = arith.constant 0 : i32
    %c0_i32_1 = arith.constant 0 : i32
    %c0_i32_2 = arith.constant 0 : i32
    return %arg0, %c0_i32, %c0_i32_0, %c0_i32_1 : i32, i32, i32, i32
  }
  func.func @transform_1(%arg0: i32) -> (i32, i32, i32) {
    %c0_i32 = arith.constant 0 : i32
    %c0_i32_0 = arith.constant 0 : i32
    %c0_i32_1 = arith.constant 0 : i32
    %c0_i32_2 = arith.constant 0 : i32
    return %c0_i32, %c0_i32_0, %c0_i32_1 : i32, i32, i32
  }
  func.func @transform_2(%arg0: i32) -> (i32, i32, i32) {
    %c0_i32 = arith.constant 0 : i32
    %c0_i32_0 = arith.constant 0 : i32
    %c0_i32_1 = arith.constant 0 : i32
    %c0_i32_2 = arith.constant 0 : i32
    return %c0_i32, %c0_i32_0, %c0_i32_1 : i32, i32, i32
  }
  func.func @transform_3(%arg0: i32) -> (i32, i32, i32) {
    %c0_i32 = arith.constant 0 : i32
    %c0_i32_0 = arith.constant 0 : i32
    %c0_i32_1 = arith.constant 0 : i32
    %c0_i32_2 = arith.constant 0 : i32
    return %c0_i32, %c0_i32_0, %c0_i32_1 : i32, i32, i32
  }
  func.func @transform_4(%arg0: i32) -> (i32, i32, i32, i32) {
    %c0_i32 = arith.constant 0 : i32
    %c0_i32_0 = arith.constant 0 : i32
    %c0_i32_1 = arith.constant 0 : i32
    %c0_i32_2 = arith.constant 0 : i32
    return %arg0, %c0_i32, %c0_i32_0, %c0_i32_1 : i32, i32, i32, i32
  }
  func.func @transform_5(%arg0: i32) -> (i32, i32, i32) {
    %c0_i32 = arith.constant 0 : i32
    %c0_i32_0 = arith.constant 0 : i32
    %c0_i32_1 = arith.constant 0 : i32
    return %arg0, %c0_i32, %c0_i32_0 : i32, i32, i32
  }
  func.func @transform_6(%arg0: i32) -> (i32, i32, i32) {
    %c0_i32 = arith.constant 0 : i32
    %c0_i32_0 = arith.constant 0 : i32
    %c0_i32_1 = arith.constant 0 : i32
    return %arg0, %c0_i32, %c0_i32_0 : i32, i32, i32
  }
}

module attributes {stable_mosaic.version = 11 : i64} {
  func.func @_combine_kernel(%arg0: i32, %arg1: memref<1x8x8x8xf32, #tpu.memory_space<vmem>>, %arg2: memref<1x8x8x8xf32, #tpu.memory_space<vmem>>, %arg3: memref<1x1x1x8xf32, #tpu.memory_space<vmem>>, %arg4: memref<1x1x1x8xf32, #tpu.memory_space<vmem>>, %arg5: memref<1x1x1x8xf32, #tpu.memory_space<vmem>>, %arg6: memref<1x8x8x8xf32, #tpu.memory_space<vmem>>) attributes {dimension_semantics = [#tpu.dimension_semantics<parallel>], iteration_bounds = array<i64: 2>, scalar_prefetch = 0 : i64, scratch_operands = 0 : i64, tpu.core_type = #tpu.core_type<tc>, window_params = [{transform_indices = @transform_0, window_bounds = array<i64: 1, 8, 8, 8>}, {transform_indices = @transform_1, window_bounds = array<i64: 1, 8, 8, 8>}, {pipeline_mode = #tpu.pipeline_mode<synchronous>, transform_indices = @transform_2, window_bounds = array<i64: 1, 1, 1, 8>}, {pipeline_mode = #tpu.pipeline_mode<synchronous>, transform_indices = @transform_3, window_bounds = array<i64: 1, 1, 1, 8>}, {pipeline_mode = #tpu.pipeline_mode<synchronous>, transform_indices = @transform_4, window_bounds = array<i64: 1, 1, 1, 8>}, {transform_indices = @transform_5, window_bounds = array<i64: 1, 8, 8, 8>}]} {
    %c0 = arith.constant 0 : index
    %c0_0 = arith.constant 0 : index
    %c0_1 = arith.constant 0 : index
    %c0_2 = arith.constant 0 : index
    %0 = vector.load %arg1[%c0, %c0_0, %c0_1, %c0_2] : memref<1x8x8x8xf32, #tpu.memory_space<vmem>>, vector<1x8x8x8xf32>
    %c0_3 = arith.constant 0 : index
    %c0_4 = arith.constant 0 : index
    %c0_5 = arith.constant 0 : index
    %c0_6 = arith.constant 0 : index
    %1 = vector.load %arg3[%c0_3, %c0_4, %c0_5, %c0_6] : memref<1x1x1x8xf32, #tpu.memory_space<vmem>>, vector<1x1x1x8xf32>
    %2 = vector.broadcast %1 : vector<1x1x1x8xf32> to vector<1x8x8x8xf32>
    %3 = arith.mulf %0, %2 : vector<1x8x8x8xf32>
    %c0_7 = arith.constant 0 : index
    %c0_8 = arith.constant 0 : index
    %c0_9 = arith.constant 0 : index
    %c0_10 = arith.constant 0 : index
    %4 = vector.load %arg2[%c0_7, %c0_8, %c0_9, %c0_10] : memref<1x8x8x8xf32, #tpu.memory_space<vmem>>, vector<1x8x8x8xf32>
    %c0_11 = arith.constant 0 : index
    %c0_12 = arith.constant 0 : index
    %c0_13 = arith.constant 0 : index
    %c0_14 = arith.constant 0 : index
    %5 = vector.load %arg4[%c0_11, %c0_12, %c0_13, %c0_14] : memref<1x1x1x8xf32, #tpu.memory_space<vmem>>, vector<1x1x1x8xf32>
    %6 = vector.broadcast %5 : vector<1x1x1x8xf32> to vector<1x8x8x8xf32>
    %7 = arith.mulf %4, %6 : vector<1x8x8x8xf32>
    %8 = arith.addf %3, %7 : vector<1x8x8x8xf32>
    %c0_15 = arith.constant 0 : index
    %c0_16 = arith.constant 0 : index
    %c0_17 = arith.constant 0 : index
    %c0_18 = arith.constant 0 : index
    %9 = vector.load %arg5[%c0_15, %c0_16, %c0_17, %c0_18] : memref<1x1x1x8xf32, #tpu.memory_space<vmem>>, vector<1x1x1x8xf32>
    %10 = vector.broadcast %9 : vector<1x1x1x8xf32> to vector<1x8x8x8xf32>
    %11 = arith.addf %8, %10 : vector<1x8x8x8xf32>
    %cst = arith.constant 0.000000e+00 : f32
    %12 = vector.broadcast %cst : f32 to vector<1x8x8x8xf32>
    %13 = arith.maximumf %11, %12 : vector<1x8x8x8xf32>
    %c0_19 = arith.constant 0 : index
    %c0_20 = arith.constant 0 : index
    %c0_21 = arith.constant 0 : index
    %c0_22 = arith.constant 0 : index
    %14 = vector.load %arg6[%c0_19, %c0_20, %c0_21, %c0_22] : memref<1x8x8x8xf32, #tpu.memory_space<vmem>>, vector<1x8x8x8xf32>
    tpu.vector_store %arg6[%c0_19, %c0_20, %c0_21, %c0_22], %13 {strides = array<i32>} : memref<1x8x8x8xf32, #tpu.memory_space<vmem>>, vector<1x8x8x8xf32>,
    return
  }
  func.func @transform_0(%arg0: i32) -> (i32, i32, i32, i32) {
    %c0_i32 = arith.constant 0 : i32
    %c0_i32_0 = arith.constant 0 : i32
    %c0_i32_1 = arith.constant 0 : i32
    %c0_i32_2 = arith.constant 0 : i32
    return %arg0, %c0_i32, %c0_i32_0, %c0_i32_1 : i32, i32, i32, i32
  }
  func.func @transform_1(%arg0: i32) -> (i32, i32, i32, i32) {
    %c0_i32 = arith.constant 0 : i32
    %c0_i32_0 = arith.constant 0 : i32
    %c0_i32_1 = arith.constant 0 : i32
    %c0_i32_2 = arith.constant 0 : i32
    return %arg0, %c0_i32, %c0_i32_0, %c0_i32_1 : i32, i32, i32, i32
  }
  func.func @transform_2(%arg0: i32) -> (i32, i32, i32, i32) {
    %c0_i32 = arith.constant 0 : i32
    %c0_i32_0 = arith.constant 0 : i32
    %c0_i32_1 = arith.constant 0 : i32
    %c0_i32_2 = arith.constant 0 : i32
    %c0_i32_3 = arith.constant 0 : i32
    return %c0_i32, %c0_i32_0, %c0_i32_1, %c0_i32_2 : i32, i32, i32, i32
  }
  func.func @transform_3(%arg0: i32) -> (i32, i32, i32, i32) {
    %c0_i32 = arith.constant 0 : i32
    %c0_i32_0 = arith.constant 0 : i32
    %c0_i32_1 = arith.constant 0 : i32
    %c0_i32_2 = arith.constant 0 : i32
    %c0_i32_3 = arith.constant 0 : i32
    return %c0_i32, %c0_i32_0, %c0_i32_1, %c0_i32_2 : i32, i32, i32, i32
  }
  func.func @transform_4(%arg0: i32) -> (i32, i32, i32, i32) {
    %c0_i32 = arith.constant 0 : i32
    %c0_i32_0 = arith.constant 0 : i32
    %c0_i32_1 = arith.constant 0 : i32
    %c0_i32_2 = arith.constant 0 : i32
    %c0_i32_3 = arith.constant 0 : i32
    return %c0_i32, %c0_i32_0, %c0_i32_1, %c0_i32_2 : i32, i32, i32, i32
  }
  func.func @transform_5(%arg0: i32) -> (i32, i32, i32, i32) {
    %c0_i32 = arith.constant 0 : i32
    %c0_i32_0 = arith.constant 0 : i32
    %c0_i32_1 = arith.constant 0 : i32
    %c0_i32_2 = arith.constant 0 : i32
    return %arg0, %c0_i32, %c0_i32_0, %c0_i32_1 : i32, i32, i32, i32
  }
}

</mosaic_0001>

<bundles_post_ra>
// kernel: basic_block_dec_forward.5
= control target key start
LH: loop header
LB: loop body
LE: loop exit
PB: predicated region body
PF: predicated region fallthrough
CT: control target
= control target key end

     0   :  { %s463_s18 = smov 0   ;;  %s535_s0 = inlined_call_operand.vmem [shape: f32[2,8,8,8], index: 0, kind: input, shape index: {}]   ;;  %s536_s1 = inlined_call_operand.vmem [shape: f32[2,8,8,8], index: 1, kind: input, shape index: {}]   ;;  %s537_s2 = inlined_call_operand.vmem [shape: f32[1,1,1,8], index: 2, kind: input, shape index: {}]   ;;  %s538_s3 = inlined_call_operand.vmem [shape: f32[1,1,1,8], index: 3, kind: input, shape index: {}]   ;;  %s539_s4 = inlined_call_operand.vmem [shape: f32[1,1,1,8], index: 4, kind: input, shape index: {}]   ;;  %s540_s5 = inlined_call_operand.vmem [shape: f32[2,8,8,8], index: 5, kind: output, shape index: {}]  }
   0x1 LB: > { %s398_s19 = sadd.s32 4294967295, %s431_s18   ;;  %p402_p0 = scmp.ge.s32.totalorder %s431_s18, 1  ;;  %s431_s18 = sphi %s463_s18, %s15_s18  }
   0x2   : > { %p197_p1 = scmp.lt.s32.totalorder %s431_s18, 3 }
   0x4   : > { %p198_p2 = pnand %p402_p0, %p197_p1 }
   0x5   : > { %p230_p3 = scmp.lt.s32.totalorder (!%p198_p2), %s398_s19, 1  ;;  %v409_v0 = vld [vmem:[%s537_s2] ss:$0 sm:$0xff] (!%p198_p2)  ;;  %vm322_vm0 = vcmask (!%p198_p2), 64512  }
   0x6   : > { %201 = sbr.rel (%p198_p2) target bundleno = 32 (0x20), region = 40  ;;  %v410_v1 = vld [vmem:[%s538_s3] ss:$0 sm:$0xff] (!%p198_p2) }
   0x7   : > { %v411_v4 = vld [vmem:[%s539_s4] ss:$0 sm:$0xff] (!%p198_p2) }
   0xd   : > { %s542_s19 = smov (!%p230_p3, %s398_s19), 1 }
   0xe   : > { %s471_s20 = sshll.u32 %s542_s19, 6 }
   0xf   : > { %s483_s27 = scalar_lea.vmem %s535_s0, %s471_s20  ;;  %s489_s30 = scalar_lea.vmem %s536_s1, %s471_s20 }
  0x10   : > { %v245_v2 = vld [vmem:[%s483_s27] sm:$0xff]  ;;  %v246_v5 = vld [vmem:[%s483_s27 + $0x8] sm:$0xff]  ;;  %v247_v10 = vld [vmem:[%s483_s27 + $0x10] sm:$0xff]  ;;  %s513_s10 = scalar_lea.vmem %s540_s5, %s471_s20 }
  0x11   : > { %v268_v3 = vld [vmem:[%s489_s30] sm:$0xff]  ;;  %v260_v6 = vmul.f32 %v409_v0, %v245_v2  ;;  %v261_v8 = vmul.f32 %v409_v0, %v246_v5  ;;  %v269_v9 = vld [vmem:[%s489_s30 + $0x8] sm:$0xff]  ;;  %v270_v11 = vld [vmem:[%s489_s30 + $0x10] sm:$0xff]  ;;  %v262_v13 = vmul.f32 %v409_v0, %v247_v10 }
  0x12   : > { %v283_v7 = vmul.f32 %v410_v1, %v268_v3  ;;  %v284_v12 = vmul.f32 %v410_v1, %v269_v9  ;;  %v285_v14 = vmul.f32 %v410_v1, %v270_v11  ;;  %v248_v15 = vld [vmem:[%s483_s27 + $0x18] sm:$0xff]  ;;  %v249_v17 = vld [vmem:[%s483_s27 + $0x20] sm:$0xff]  ;;  %v250_v23 = vld [vmem:[%s483_s27 + $0x28] sm:$0xff] }
  0x13   : > { %v271_v16 = vld [vmem:[%s489_s30 + $0x18] sm:$0xff]  ;;  %v263_v19 = vmul.f32 %v409_v0, %v248_v15  ;;  %v264_v21 = vmul.f32 %v409_v0, %v249_v17  ;;  %v272_v22 = vld [vmem:[%s489_s30 + $0x20] sm:$0xff]  ;;  %v273_v24 = vld [vmem:[%s489_s30 + $0x28] sm:$0xff]  ;;  %v265_v28 = vmul.f32 %v409_v0, %v250_v23 }
  0x14   : > { %v291_v18 = vadd.f32 %v283_v7, %v260_v6  ;;  %v286_v20 = vmul.f32 %v410_v1, %v271_v16  ;;  %v292_v25 = vadd.f32 %v284_v12, %v261_v8  ;;  %v293_v26 = vadd.f32 %v285_v14, %v262_v13  ;;  %v251_v29 = vld [vmem:[%s483_s27 + $0x30] sm:$0xff]  ;;  %v252_v31 = vld [vmem:[%s483_s27 + $0x38] sm:$0xff] }
  0x15   : > { %v287_v27 = vmul.f32 %v410_v1, %v272_v22  ;;  %v274_v30 = vld [vmem:[%s489_s30 + $0x30] sm:$0xff]  ;;  %v288_v34 = vmul.f32 %v410_v1, %v273_v24  ;;  %v266_v35 = vmul.f32 %v409_v0, %v251_v29  ;;  %v275_v40 = vld [vmem:[%s489_s30 + $0x38] sm:$0xff]  ;;  %v267_v44 = vmul.f32 %v409_v0, %v252_v31 }
  0x16   : > { %v306_v32 = vadd.f32 %v411_v4, %v291_v18  ;;  %v294_v33 = vadd.f32 %v286_v20, %v263_v19  ;;  %v307_v36 = vadd.f32 %v411_v4, %v292_v25  ;;  %v308_v37 = vadd.f32 %v411_v4, %v293_v26 }
  0x17   : > { %v295_v38 = vadd.f32 %v287_v27, %v264_v21  ;;  %v289_v39 = vmul.f32 %v410_v1, %v274_v30  ;;  %v296_v43 = vadd.f32 %v288_v34, %v265_v28  ;;  %v290_v51 = vmul.f32 %v410_v1, %v275_v40 }
  0x18   : > { %v314_v41 = vmax.f32 %v306_v32, 0.0  ;;  %v309_v42 = vadd.f32 %v411_v4, %v294_v33  ;;  %v315_v45 = vmax.f32 %v307_v36, 0.0  ;;  %v316_v46 = vmax.f32 %v308_v37, 0.0 }
  0x19   : > { %v310_v47 = vadd.f32 %v411_v4, %v295_v38  ;;  %v297_v48 = vadd.f32 %v289_v39, %v266_v35  ;;  %v311_v50 = vadd.f32 %v411_v4, %v296_v43  ;;  %v298_v55 = vadd.f32 %v290_v51, %v267_v44 }
  0x1a   : > { %323 = vst.msk [vmem:[%s513_s10] sm:$0xff] %vm322_vm0, %v314_v41  ;;  %v317_v49 = vmax.f32 %v309_v42, 0.0  ;;  %324 = vst.msk [vmem:[%s513_s10 + $0x8] sm:$0xff] %vm322_vm0, %v315_v45 }
  0x1b   : > { %325 = vst.msk [vmem:[%s513_s10 + $0x10] sm:$0xff] %vm322_vm0, %v316_v46  ;;  %v318_v52 = vmax.f32 %v310_v47, 0.0  ;;  %v312_v53 = vadd.f32 %v411_v4, %v297_v48  ;;  %v319_v54 = vmax.f32 %v311_v50, 0.0  ;;  %v313_v57 = vadd.f32 %v411_v4, %v298_v55 }
  0x1c   : > { %326 = vst.msk [vmem:[%s513_s10 + $0x18] sm:$0xff] %vm322_vm0, %v317_v49 }
  0x1d   : > { %327 = vst.msk [vmem:[%s513_s10 + $0x20] sm:$0xff] %vm322_vm0, %v318_v52  ;;  %v320_v56 = vmax.f32 %v312_v53, 0.0  ;;  %328 = vst.msk [vmem:[%s513_s10 + $0x28] sm:$0xff] %vm322_vm0, %v319_v54  ;;  %v321_v58 = vmax.f32 %v313_v57, 0.0 }
  0x1f   : > { %329 = vst.msk [vmem:[%s513_s10 + $0x30] sm:$0xff] %vm322_vm0, %v320_v56  ;;  %330 = vst.msk [vmem:[%s513_s10 + $0x38] sm:$0xff] %vm322_vm0, %v321_v58 }
  0x20 PF: > { %s15_s18 = sadd.s32 1, %s431_s18  }
  0x21   : > { %p12_p4 = scmp.ge.s32.totalorder %s15_s18, 4  }
  0x23   :  { %14 = sbr.rel (!%p12_p4) target bundleno = 1 (0x1), region = 73 }

// kernel: basic_block_dec_forward.3
= control target key start
LH: loop header
LB: loop body
LE: loop exit
PB: predicated region body
PF: predicated region fallthrough
CT: control target
= control target key end

     0   :  { %s2138_s15 = smov 0   ;;  %s2411_s0 = inlined_call_operand.vmem [shape: f32[2,8,8,8], index: 0, kind: input, shape index: {}]   ;;  %s2412_s1 = inlined_call_operand.vmem [shape: f32[9,8,8], index: 1, kind: input, shape index: {}]   ;;  %s2413_s2 = inlined_call_operand.vmem [shape: f32[2,8,8,8], index: 2, kind: output, shape index: {0}]   ;;  %s2414_s3 = inlined_call_operand.vmem [shape: f32[2,1,8], index: 3, kind: output, shape index: {1}]   ;;  %s2415_s4 = inlined_call_operand.vmem [shape: f32[2,1,8], index: 4, kind: output, shape index: {2}]  }
   0x1 LB: > { %s1729_s16 = sadd.s32 4294967295, %s2110_s15   ;;  %p1733_p0 = scmp.ge.s32.totalorder %s2110_s15, 1  ;;  %s2110_s15 = sphi %s2138_s15, %s15_s15  }
   0x2   : > { %p167_p1 = scmp.lt.s32.totalorder %s2110_s15, 3 }
   0x4   : > { %p168_p2 = pnand %p1733_p0, %p167_p1 }
   0x5   : > { %v1738_v0 = vld [vmem:[%s2412_s1 + $0x8] sm:$0xff] (!%p168_p2)  ;;  %v2152_v1 = vld [vmem:[%s2412_s1 + $0x20] sm:$0xff] (!%p168_p2)  ;;  %vm223_vm0 = vcmask (!%p168_p2), 64512   ;;  %vm225_vm1 = vcmask (!%p168_p2), 58368   ;;  %p2156_p3 = scmp.lt.s32.totalorder (!%p168_p2), %s1729_s16, 1  ;;  %v2112_v2 = vmov (!%p168_p2), 0.0  }
   0x6   : > { %171 = sbr.rel (%p168_p2) target bundleno = 329 (0x149), region = 28  ;;  %1903 = vmatprep.subr.mxu1 (!%p168_p2), %v1738_v0  ;;  %1959 = vmatprep.subr.mxu0 (!%p168_p2), %v2152_v1  ;;  %224 = vst.msk [vmem:[#allocation2] sm:$0xff] (!%p168_p2), %vm223_vm0, %v2112_v2  ;;  %227 = vst.msk [vmem:[#allocation2 + $0x10] sm:$0xff] (!%p168_p2), %vm223_vm0, %v2112_v2  ;;  %v262_v3 = vld [vmem:[%s2412_s1] sm:$0xff] (!%p168_p2)  ;;  %v1782_v4 = vld [vmem:[%s2412_s1 + $0x28] sm:$0xff] (!%p168_p2)  ;;  %vm1621_vm2 = vcmask (!%p168_p2), 57344  }
   0x7   : > { %226 = vst.msk [vmem:[#allocation2 + $0x8] sm:$0x3] (!%p168_p2), %vm225_vm1, %v2112_v2  ;;  %228 = vst.msk [vmem:[#allocation2 + $0x18] sm:$0x3] (!%p168_p2), %vm225_vm1, %v2112_v2  ;;  %1904 = vmatpush3.msra.mxu1 (!%p168_p2), %v1738_v0  ;;  %1960 = vmatpush3.msra.mxu0 (!%p168_p2), %v2152_v1  ;;  %v1791_v17 = vld [vmem:[%s2412_s1 + $0x30] sm:$0xff] (!%p168_p2)  ;;  %v1800_v25 = vld [vmem:[%s2412_s1 + $0x38] sm:$0xff] (!%p168_p2) }
   0x8   : > { %229 = vst.msk [vmem:[#allocation2 + $0x20] sm:$0xff] (!%p168_p2), %vm223_vm0, %v2112_v2  ;;  %231 = vst.msk [vmem:[#allocation2 + $0x30] sm:$0xff] (!%p168_p2), %vm223_vm0, %v2112_v2  ;;  %1917 = vmatprep.subr.mxu1 (!%p168_p2), %v262_v3  ;;  %1973 = vmatprep.subr.mxu0 (!%p168_p2), %v1782_v4  ;;  %v1755_v18 = vld [vmem:[%s2412_s1 + $0x10] sm:$0xff] (!%p168_p2)  ;;  %v1764_v34 = vld [vmem:[%s2412_s1 + $0x18] sm:$0xff] (!%p168_p2) }
   0x9   : > { %230 = vst.msk [vmem:[#allocation2 + $0x28] sm:$0x3] (!%p168_p2), %vm225_vm1, %v2112_v2  ;;  %232 = vst.msk [vmem:[#allocation2 + $0x38] sm:$0x3] (!%p168_p2), %vm225_vm1, %v2112_v2  ;;  %v1809_v40 = vld [vmem:[%s2412_s1 + $0x40] sm:$0xff] (!%p168_p2) }
   0xa   : > { %233 = vst.msk [vmem:[#allocation2 + $0x40] sm:$0xff] (!%p168_p2), %vm223_vm0, %v2112_v2  ;;  %235 = vst.msk [vmem:[#allocation2 + $0x50] sm:$0xff] (!%p168_p2), %vm223_vm0, %v2112_v2 }
   0xb   : > { %234 = vst.msk [vmem:[#allocation2 + $0x48] sm:$0x3] (!%p168_p2), %vm225_vm1, %v2112_v2  ;;  %236 = vst.msk [vmem:[#allocation2 + $0x58] sm:$0x3] (!%p168_p2), %vm225_vm1, %v2112_v2 }
   0xc   : > { %237 = vst.msk [vmem:[#allocation2 + $0x60] sm:$0xff] (!%p168_p2), %vm223_vm0, %v2112_v2  ;;  %239 = vst.msk [vmem:[#allocation2 + $0x70] sm:$0xff] (!%p168_p2), %vm223_vm0, %v2112_v2 }
   0xd   : > { %238 = vst.msk [vmem:[#allocation2 + $0x68] sm:$0x3] %vm225_vm1, %v2112_v2  ;;  %240 = vst.msk [vmem:[#allocation2 + $0x78] sm:$0x3] %vm225_vm1, %v2112_v2  ;;  %s2418_s16 = smov (!%p2156_p3, %s1729_s16), 1  ;;  %v254_v28 = vld [vmem:[#allocation2] sm:$0xff] }
   0xe   : > { %241 = vst.msk [vmem:[#allocation2 + $0x80] sm:$0xff] %vm223_vm0, %v2112_v2  ;;  %243 = vst.msk [vmem:[#allocation2 + $0x90] sm:$0xff] %vm223_vm0, %v2112_v2  ;;  %s1820_s26 = sshll.u32 %s2418_s16, 6  ;;  %v263_v11 = vld [vmem:[#allocation2 + $0x1] sm:$0xff]  ;;  %s211_s21 = scalar_lea.vmem %s2414_s3, %s2418_s16 }
   0xf   : > { %242 = vst.msk [vmem:[#allocation2 + $0x88] sm:$0x3] %vm225_vm1, %v2112_v2  ;;  %244 = vst.msk [vmem:[#allocation2 + $0x98] sm:$0x3] %vm225_vm1, %v2112_v2  ;;  %s203_s29 = scalar_lea.vmem %s2411_s0, %s1820_s26  ;;  %1905 = vmatprep.mubr.msk.f32.mxu1 %vm223_vm0, %v263_v11  ;;  %v531_v42 = vld [vmem:[#allocation2 + $0x2] sm:$0xff]  ;;  %s2366_s18 = scalar_lea.vmem %s2413_s2, %s1820_s26 }
  0x10   : > { %v215_v5 = vld [vmem:[%s203_s29] sm:$0xff]  ;;  %v216_v6 = vld [vmem:[%s203_s29 + $0x8] sm:$0xff]  ;;  %v217_v7 = vld [vmem:[%s203_s29 + $0x10] sm:$0xff]  ;;  %s214_s24 = scalar_lea.vmem %s2415_s4, %s2418_s16 }
  0x11   : > { %246 = vst.msk [vmem:[#allocation2 + $0x11] sm:$0xff] %vm223_vm0, %v215_v5  ;;  %247 = vst.msk [vmem:[#allocation2 + $0x21] sm:$0xff] %vm223_vm0, %v216_v6  ;;  %v218_v8 = vld [vmem:[%s203_s29 + $0x18] sm:$0xff]  ;;  %v219_v9 = vld [vmem:[%s203_s29 + $0x20] sm:$0xff] }
  0x12   : > { %248 = vst.msk [vmem:[#allocation2 + $0x31] sm:$0xff] %vm223_vm0, %v217_v7  ;;  %v220_v10 = vld [vmem:[%s203_s29 + $0x28] sm:$0xff]  ;;  %249 = vst.msk [vmem:[#allocation2 + $0x41] sm:$0xff] %vm223_vm0, %v218_v8  ;;  %v221_v12 = vld [vmem:[%s203_s29 + $0x30] sm:$0xff] }
  0x13   : > { %250 = vst.msk [vmem:[#allocation2 + $0x51] sm:$0xff] %vm223_vm0, %v219_v9  ;;  %251 = vst.msk [vmem:[#allocation2 + $0x61] sm:$0xff] %vm223_vm0, %v220_v10  ;;  %v222_v13 = vld [vmem:[%s203_s29 + $0x38] sm:$0xff] }
  0x14   : > { %252 = vst.msk [vmem:[#allocation2 + $0x71] sm:$0xff] %vm223_vm0, %v221_v12  ;;  %253 = vst.msk [vmem:[#allocation2 + $0x81] sm:$0xff] %vm223_vm0, %v222_v13 }
  0x15   : > { %v1127_v44 = vld [vmem:[#allocation2 + $0x90] sm:$0xff] }
  0x16   : > { %v1274_v46 = vld [vmem:[#allocation2 + $0x91] sm:$0xff] }
  0x17   : > { %v1421_v47 = vld [vmem:[#allocation2 + $0x92] sm:$0xff] }
  0x18   : > { %v264_v14 = vld [vmem:[#allocation2 + $0x11] sm:$0xff]  ;;  %v2209_v15 = vld [vmem:[#allocation2 + $0x21] sm:$0xff] }
  0x19   : > { %1906 = vmatmul.mubr.msk.f32.vlgmr.msra.gmra.mrb[0].mxu1 %vm223_vm0, %v264_v14  ;;  %1961 = vmatprep.mubr.msk.f32.mxu0 %vm223_vm0, %v264_v14  ;;  %v2213_v16 = vld [vmem:[#allocation2 + $0x31] sm:$0xff]  ;;  %v2225_v19 = vld [vmem:[#allocation2 + $0x41] sm:$0xff] }
  0x1a   : > { %1918 = vmatpush3.msra.mxu1 %v262_v3  ;;  %1962 = vmatmul.mubr.msk.f32.vlgmr.msra.gmra.mrb[0].mxu0 %vm223_vm0, %v2209_v15  ;;  %v972_v20 = vld [vmem:[#allocation2 + $0x12] sm:$0xff]  ;;  %v2238_v22 = vld [vmem:[#allocation2 + $0x22] sm:$0xff] }
  0x1b   : > { %1974 = vmatpush3.msra.mxu0 %v1782_v4  ;;  %1908 = vmatprep.mubr.msk.f32.mxu1 %vm223_vm0, %v2209_v15  ;;  %v2235_v21 = vld [vmem:[#allocation2 + $0x51] sm:$0xff]  ;;  %v2240_v23 = vld [vmem:[#allocation2 + $0x61] sm:$0xff] }
  0x1c   : > { %1964 = vmatprep.mubr.msk.f32.mxu0 %vm223_vm0, %v2213_v16  ;;  %1987 = vmatprep.subr.mxu0 %v1791_v17  ;;  %v2242_v24 = vld [vmem:[#allocation2 + $0x32] sm:$0xff]  ;;  %v2257_v27 = vld [vmem:[#allocation2 + $0x42] sm:$0xff] }
  0x1d   : > { %1909 = vmatmul.mubr.msk.f32.gmra.mrb[2].mxu1 %vm223_vm0, %v2213_v16  ;;  %1931 = vmatprep.subr.mxu1 %v1755_v18  ;;  %v2253_v26 = vld [vmem:[#allocation2 + $0x71] sm:$0xff]  ;;  %v2268_v31 = vld [vmem:[#allocation2 + $0x62] sm:$0xff] }
  0x1e   : > { %1965 = vmatmul.mubr.msk.f32.gmra.mrb[2].mxu0 %vm223_vm0, %v2225_v19  ;;  %1911 = vmatprep.mubr.msk.f32.mxu1 %vm223_vm0, %v2225_v19  ;;  %v2259_v29 = vld [vmem:[#allocation2 + $0x52] sm:$0xff]  ;;  %v256_v32 = vld [vmem:[#allocation2 + $0x20] sm:$0xff] }
  0x1f   : > { %1975 = vmatprep.mubr.msk.f32.mxu0 %vm223_vm0, %v972_v20  ;;  %v255_v30 = vld [vmem:[#allocation2 + $0x10] sm:$0xff]  ;;  %v2281_v36 = vld [vmem:[#allocation2 + $0x82] sm:$0xff] }
  0x20   : > { %v2270_v33 = vld [vmem:[#allocation2 + $0x72] sm:$0xff]  ;;  %v258_v37 = vld [vmem:[#allocation2 + $0x40] sm:$0xff] }
  0x21   : > { %1912 = vmatmul.mubr.msk.f32.gmra.mrb[4].mxu1 %vm223_vm0, %v2235_v21  ;;  %v257_v35 = vld [vmem:[#allocation2 + $0x30] sm:$0xff]  ;;  %v260_v39 = vld [vmem:[#allocation2 + $0x60] sm:$0xff] }
  0x22   : > { %1976 = vmatmul.mubr.msk.f32.vlgmr.msra.gmra.mrb[0].mxu0 %vm223_vm0, %v2238_v22  ;;  %1914 = vmatprep.mubr.msk.f32.mxu1 %vm223_vm0, %v2240_v23  ;;  %v259_v38 = vld [vmem:[#allocation2 + $0x50] sm:$0xff]  ;;  %v1126_v43 = vld [vmem:[#allocation2 + $0x80] sm:$0xff] }
  0x23   : > { %1988 = vmatpush3.msra.mxu0 %v1791_v17  ;;  %1978 = vmatprep.mubr.msk.f32.mxu0 %vm223_vm0, %v2242_v24  ;;  %v261_v41 = vld [vmem:[#allocation2 + $0x70] sm:$0xff]  ;;  %v1273_v45 = vld [vmem:[#allocation2 + $0x81] sm:$0xff] }
  0x24   : > { %2001 = vmatprep.subr.mxu0 %v1800_v25 }
  0x25   : > { %1915 = vmatmul.mubr.msk.f32.gmra.mrb[6].mxu1 %vm223_vm0, %v2253_v26 }
  0x26   : > { %1979 = vmatmul.mubr.msk.f32.gmra.mrb[2].mxu0 %vm223_vm0, %v2257_v27  ;;  %1919 = vmatprep.mubr.msk.f32.mxu1 %vm223_vm0, %v254_v28 }
  0x27   : > { %1981 = vmatprep.mubr.msk.f32.mxu0 %vm223_vm0, %v2259_v29 }
  0x29   : > { %1920 = vmatmul.mubr.msk.f32.vlgmr.msra.gmra.mrb[0].mxu1 %vm223_vm0, %v255_v30 }
  0x2a   : > { %1932 = vmatpush3.msra.mxu1 %v1755_v18  ;;  %1982 = vmatmul.mubr.msk.f32.gmra.mrb[4].mxu0 %vm223_vm0, %v2268_v31 }
  0x2b   : > { %1922 = vmatprep.mubr.msk.f32.mxu1 %vm223_vm0, %v256_v32  ;;  %1984 = vmatprep.mubr.msk.f32.mxu0 %vm223_vm0, %v2270_v33 }
  0x2c   : > { %1945 = vmatprep.subr.mxu1 %v1764_v34 }
  0x2d   : > { %1923 = vmatmul.mubr.msk.f32.gmra.mrb[2].mxu1 %vm223_vm0, %v257_v35 }
  0x2e   : > { %1985 = vmatmul.mubr.msk.f32.gmra.mrb[6].mxu0 %vm223_vm0, %v2281_v36  ;;  %1925 = vmatprep.mubr.msk.f32.mxu1 %vm223_vm0, %v258_v37 }
  0x2f   : > { %1989 = vmatprep.mubr.msk.f32.mxu0 %vm223_vm0, %v256_v32 }
  0x31   : > { %1926 = vmatmul.mubr.msk.f32.gmra.mrb[4].mxu1 %vm223_vm0, %v259_v38 }
  0x32   : > { %1990 = vmatmul.mubr.msk.f32.vlgmr.msra.gmra.mrb[0].mxu0 %vm223_vm0, %v257_v35  ;;  %1928 = vmatprep.mubr.msk.f32.mxu1 %vm223_vm0, %v260_v39 }
  0x33   : > { %2002 = vmatpush3.msra.mxu0 %v1800_v25  ;;  %1992 = vmatprep.mubr.msk.f32.mxu0 %vm223_vm0, %v258_v37 }
  0x34   : > { %2015 = vmatprep.subr.mxu0 %v1809_v40 }
  0x35   : > { %1929 = vmatmul.mubr.msk.f32.gmra.mrb[6].mxu1 %vm223_vm0, %v261_v41 }
  0x36   : > { %1993 = vmatmul.mubr.msk.f32.gmra.mrb[2].mxu0 %vm223_vm0, %v259_v38  ;;  %1933 = vmatprep.mubr.msk.f32.mxu1 %vm223_vm0, %v531_v42 }
  0x37   : > { %1995 = vmatprep.mubr.msk.f32.mxu0 %vm223_vm0, %v260_v39 }
  0x39   : > { %1934 = vmatmul.mubr.msk.f32.vlgmr.msra.gmra.mrb[0].mxu1 %vm223_vm0, %v972_v20 }
  0x3a   : > { %1946 = vmatpush3.msra.mxu1 %v1764_v34  ;;  %1996 = vmatmul.mubr.msk.f32.gmra.mrb[4].mxu0 %vm223_vm0, %v261_v41 }
  0x3b   : > { %1936 = vmatprep.mubr.msk.f32.mxu1 %vm223_vm0, %v2238_v22  ;;  %1998 = vmatprep.mubr.msk.f32.mxu0 %vm223_vm0, %v1126_v43 }
  0x3c   : > { %2029 = vmatprep.subr.mxu1 %v2152_v1 }
  0x3d   : > { %1937 = vmatmul.mubr.msk.f32.gmra.mrb[2].mxu1 %vm223_vm0, %v2242_v24 }
  0x3e   : > { %1999 = vmatmul.mubr.msk.f32.gmra.mrb[6].mxu0 %vm223_vm0, %v1127_v44  ;;  %1939 = vmatprep.mubr.msk.f32.mxu1 %vm223_vm0, %v2257_v27 }
  0x3f   : > { %2003 = vmatprep.mubr.msk.f32.mxu0 %vm223_vm0, %v2209_v15 }
  0x41   : > { %1940 = vmatmul.mubr.msk.f32.gmra.mrb[4].mxu1 %vm223_vm0, %v2259_v29 }
  0x42   : > { %2004 = vmatmul.mubr.msk.f32.vlgmr.msra.gmra.mrb[0].mxu0 %vm223_vm0, %v2213_v16  ;;  %1942 = vmatprep.mubr.msk.f32.mxu1 %vm223_vm0, %v2268_v31 }
  0x43   : > { %2016 = vmatpush3.msra.mxu0 %v1809_v40  ;;  %2006 = vmatprep.mubr.msk.f32.mxu0 %vm223_vm0, %v2225_v19 }
  0x45   : > { %1943 = vmatmul.mubr.msk.f32.gmra.mrb[6].mxu1 %vm223_vm0, %v2270_v33 }
  0x46   : > { %2007 = vmatmul.mubr.msk.f32.gmra.mrb[2].mxu0 %vm223_vm0, %v2235_v21  ;;  %1947 = vmatprep.mubr.msk.f32.mxu1 %vm223_vm0, %v255_v30 }
  0x47   : > { %2009 = vmatprep.mubr.msk.f32.mxu0 %vm223_vm0, %v2240_v23 }
  0x49   : > { %1948 = vmatmul.mubr.msk.f32.vlgmr.msra.gmra.mrb[0].mxu1 %vm223_vm0, %v256_v32 }
  0x4a   : > { %2030 = vmatpush3.msra.mxu1 %v2152_v1  ;;  %2010 = vmatmul.mubr.msk.f32.gmra.mrb[4].mxu0 %vm223_vm0, %v2253_v26 }
  0x4b   : > { %1950 = vmatprep.mubr.msk.f32.mxu1 %vm223_vm0, %v257_v35  ;;  %2012 = vmatprep.mubr.msk.f32.mxu0 %vm223_vm0, %v1273_v45 }
  0x4d   : > { %1951 = vmatmul.mubr.msk.f32.gmra.mrb[2].mxu1 %vm223_vm0, %v258_v37 }
  0x4e   : > { %2013 = vmatmul.mubr.msk.f32.gmra.mrb[6].mxu0 %vm223_vm0, %v1274_v46  ;;  %1953 = vmatprep.mubr.msk.f32.mxu1 %vm223_vm0, %v259_v38 }
  0x4f   : > { %2017 = vmatprep.mubr.msk.f32.mxu0 %vm223_vm0, %v2238_v22 }
  0x51   : > { %1954 = vmatmul.mubr.msk.f32.gmra.mrb[4].mxu1 %vm223_vm0, %v260_v39 }
  0x52   : > { %2018 = vmatmul.mubr.msk.f32.vlgmr.msra.gmra.mrb[0].mxu0 %vm223_vm0, %v2242_v24  ;;  %1956 = vmatprep.mubr.msk.f32.mxu1 %vm223_vm0, %v261_v41 }
  0x53   : > { %2020 = vmatprep.mubr.msk.f32.mxu0 %vm223_vm0, %v2257_v27 }
  0x55   : > { %1957 = vmatmul.mubr.msk.f32.gmra.mrb[6].mxu1 %vm223_vm0, %v1126_v43 }
  0x56   : > { %2021 = vmatmul.mubr.msk.f32.gmra.mrb[2].mxu0 %vm223_vm0, %v2259_v29  ;;  %1967 = vmatprep.mubr.msk.f32.mxu1 %vm223_vm0, %v2235_v21 }
  0x57   : > { %2023 = vmatprep.mubr.msk.f32.mxu0 %vm223_vm0, %v2268_v31 }
  0x59   : > { %1968 = vmatmul.mubr.msk.f32.vlgmr.msra.gmra.mrb[4].mxu1 %vm223_vm0, %v2240_v23 }
  0x5a   : > { %2024 = vmatmul.mubr.msk.f32.gmra.mrb[4].mxu0 %vm223_vm0, %v2270_v33  ;;  %1970 = vmatprep.mubr.msk.f32.mxu1 %vm223_vm0, %v2253_v26 }
  0x5b   : > { %2026 = vmatprep.mubr.msk.f32.mxu0 %vm223_vm0, %v2281_v36 }
  0x5d   : > { %1971 = vmatmul.mubr.msk.f32.gmra.mrb[6].mxu1 %vm223_vm0, %v1273_v45 }
  0x5e   : > { %2027 = vmatmul.mubr.msk.f32.gmra.mrb[6].mxu0 %vm223_vm0, %v1421_v47 }
 0x11c   : > { %v1949_v48 = vpop.f32.mrb[0].mxu1 }
 0x11d   : > { %v778_v49 = vpop.f32.mrb[1].mxu1 }
 0x120   : > { %v1952_v50 = vpop.f32.mrb[2].mxu1 }
 0x121   : > { %v788_v51 = vpop.f32.mrb[3].mxu1 }
 0x125   : > { %v2019_v52 = vpop.f32.mrb[0].mxu0 }
 0x126   : > { %v2031_v53 = vadd.f32 %v2019_v52, %v1949_v48  ;;  %v1514_v54 = vpop.f32.mrb[1].mxu0 }
 0x127   : > { %v2032_v55 = vadd.f32 %v1514_v54, %v778_v49 }
 0x128   : > { %1562 = vst.msk [vmem:[%s2366_s18 + $0x8] sm:$0xff] %vm223_vm0, %v2031_v53  ;;  %v1570_v56 = vsel %vm223_vm0, %v2031_v53, 0.0  ;;  %v1592_v57 = vmul.f32 %v2031_v53, %v2031_v53 }
 0x129   : > { %1561 = vst.msk [vmem:[%s2366_s18] sm:$0xff] %vm223_vm0, %v2032_v55  ;;  %v1569_v58 = vsel %vm223_vm0, %v2032_v55, 0.0  ;;  %v1591_v59 = vmul.f32 %v2032_v55, %v2032_v55  ;;  %v2022_v60 = vpop.f32.mrb[2].mxu0 }
 0x12a   : > { %v1600_v61 = vsel %vm223_vm0, %v1592_v57, 0.0  ;;  %v1571_v62 = vadd.f32 %v1570_v56, %v1569_v58  ;;  %v2033_v63 = vadd.f32 %v2022_v60, %v1952_v50  ;;  %v1524_v0 = vpop.f32.mrb[3].mxu0 }
 0x12b   : > { %v1599_v1 = vsel %vm223_vm0, %v1591_v59, 0.0  ;;  %v2034_v2 = vadd.f32 %v1524_v0, %v788_v51 }
 0x12c   : > { %v1601_v3 = vadd.f32 %v1600_v61, %v1599_v1  ;;  %1564 = vst.msk [vmem:[%s2366_s18 + $0x18] sm:$0xff] %vm223_vm0, %v2033_v63  ;;  %v1969_v4 = vpop.f32.mrb[4].mxu1  ;;  %v1594_v5 = vmul.f32 %v2033_v63, %v2033_v63  ;;  %v1574_v13 = vsel %vm223_vm0, %v2033_v63, 0.0 }
 0x12d   : > { %1563 = vst.msk [vmem:[%s2366_s18 + $0x10] sm:$0xff] %vm223_vm0, %v2034_v2  ;;  %v1572_v6 = vsel %vm223_vm0, %v2034_v2, 0.0  ;;  %v1593_v7 = vmul.f32 %v2034_v2, %v2034_v2  ;;  %v945_v8 = vpop.f32.mrb[5].mxu1  ;;  %v2025_v9 = vpop.f32.mrb[4].mxu0 }
 0x12e   : > { %v1573_v10 = vadd.f32 %v1572_v6, %v1571_v62  ;;  %v2035_v11 = vadd.f32 %v2025_v9, %v1969_v4  ;;  %v1534_v12 = vpop.f32.mrb[5].mxu0  ;;  %v1604_v19 = vsel %vm223_vm0, %v1594_v5, 0.0 }
 0x12f   : > { %v1602_v14 = vsel %vm223_vm0, %v1593_v7, 0.0  ;;  %v2036_v15 = vadd.f32 %v1534_v12, %v945_v8 }
 0x130   : > { %v1603_v16 = vadd.f32 %v1602_v14, %v1601_v3  ;;  %1566 = vst.msk [vmem:[%s2366_s18 + $0x28] sm:$0xff] %vm223_vm0, %v2035_v11  ;;  %v1575_v17 = vadd.f32 %v1574_v13, %v1573_v10  ;;  %v1972_v18 = vpop.f32.mrb[6].mxu1  ;;  %v1596_v20 = vmul.f32 %v2035_v11, %v2035_v11  ;;  %v1578_v29 = vsel %vm223_vm0, %v2035_v11, 0.0 }
 0x131   : > { %1565 = vst.msk [vmem:[%s2366_s18 + $0x20] sm:$0xff] %vm223_vm0, %v2036_v15  ;;  %v1576_v21 = vsel %vm223_vm0, %v2036_v15, 0.0  ;;  %v1595_v22 = vmul.f32 %v2036_v15, %v2036_v15  ;;  %v955_v23 = vpop.f32.mrb[7].mxu1  ;;  %v2028_v24 = vpop.f32.mrb[6].mxu0 }
 0x132   : > { %v1577_v25 = vadd.f32 %v1576_v21, %v1575_v17  ;;  %v1605_v26 = vadd.f32 %v1604_v19, %v1603_v16  ;;  %v2037_v27 = vadd.f32 %v2028_v24, %v1972_v18  ;;  %v1544_v28 = vpop.f32.mrb[7].mxu0  ;;  %v1608_v34 = vsel %vm223_vm0, %v1596_v20, 0.0 }
 0x133   : > { %v1606_v30 = vsel %vm223_vm0, %v1595_v22, 0.0  ;;  %v2038_v31 = vadd.f32 %v1544_v28, %v955_v23 }
 0x134   : > { %v1607_v32 = vadd.f32 %v1606_v30, %v1605_v26  ;;  %1568 = vst.msk [vmem:[%s2366_s18 + $0x38] sm:$0xff] %vm223_vm0, %v2037_v27  ;;  %v1579_v33 = vadd.f32 %v1578_v29, %v1577_v25  ;;  %v1598_v35 = vmul.f32 %v2037_v27, %v2037_v27  ;;  %v1582_v40 = vsel %vm223_vm0, %v2037_v27, 0.0 }
 0x135   : > { %1567 = vst.msk [vmem:[%s2366_s18 + $0x30] sm:$0xff] %vm223_vm0, %v2038_v31  ;;  %v1580_v36 = vsel %vm223_vm0, %v2038_v31, 0.0  ;;  %v1597_v37 = vmul.f32 %v2038_v31, %v2038_v31 }
 0x136   : > { %v1581_v38 = vadd.f32 %v1580_v36, %v1579_v33  ;;  %v1609_v39 = vadd.f32 %v1608_v34, %v1607_v32  ;;  %v1612_v44 = vsel %vm223_vm0, %v1598_v35, 0.0 }
 0x137   : > { %v1610_v41 = vsel %vm223_vm0, %v1597_v37, 0.0 }
 0x138   : > { %v1583_v42 = vadd.f32 %v1582_v40, %v1581_v38  ;;  %v1611_v43 = vadd.f32 %v1610_v41, %v1609_v39 }
 0x13a   : > { %v1584_v45 = vrot.slane %v1583_v42, 4  ;;  %v1613_v46 = vadd.f32 %v1612_v44, %v1611_v43 }
 0x13c   : > { %v1585_v47 = vadd.f32 %v1584_v45, %v1583_v42  ;;  %v1614_v48 = vrot.slane %v1613_v46, 4 }
 0x13e   : > { %v1586_v49 = vrot.slane %v1585_v47, 2  ;;  %v1615_v50 = vadd.f32 %v1614_v48, %v1613_v46 }
 0x140   : > { %v1587_v51 = vadd.f32 %v1586_v49, %v1585_v47  ;;  %v1616_v52 = vrot.slane %v1615_v50, 2 }
 0x142   : > { %v1588_v53 = vrot.slane %v1587_v51, 1  ;;  %v1617_v54 = vadd.f32 %v1616_v52, %v1615_v50 }
 0x144   : > { %v1589_v55 = vadd.f32 %v1588_v53, %v1587_v51  ;;  %v1618_v56 = vrot.slane %v1617_v54, 1 }
 0x146   : > { %v1619_v57 = vadd.f32 %v1618_v56, %v1617_v54  ;;  %1622 = vst.msk [vmem:[%s211_s21] sm:$0x1] %vm1621_vm2, %v1589_v55 }
 0x148   : > { %1623 = vst.msk [vmem:[%s214_s24] sm:$0x1] %vm1621_vm2, %v1619_v57 }
 0x149 PF: > { %s15_s15 = sadd.s32 1, %s2110_s15  }
 0x14a   : > { %p12_p4 = scmp.ge.s32.totalorder %s15_s15, 4  }
 0x14c   :  { %14 = sbr.rel (!%p12_p4) target bundleno = 1 (0x1), region = 92 }

// kernel: basic_block_dec_forward.4
= control target key start
LH: loop header
LB: loop body
LE: loop exit
PB: predicated region body
PF: predicated region fallthrough
CT: control target
= control target key end

     0   :  { %s2242_s21 = smov 0   ;;  %s2521_s0 = inlined_call_operand.vmem [shape: f32[2,8,8,8], index: 0, kind: input, shape index: {}]   ;;  %s2522_s1 = inlined_call_operand.vmem [shape: f32[1,1,8], index: 1, kind: input, shape index: {}]   ;;  %s2523_s2 = inlined_call_operand.vmem [shape: f32[1,1,8], index: 2, kind: input, shape index: {}]   ;;  %s2524_s3 = inlined_call_operand.vmem [shape: f32[9,8,8], index: 3, kind: input, shape index: {}]   ;;  %s2525_s4 = inlined_call_operand.vmem [shape: f32[2,8,8,8], index: 4, kind: output, shape index: {0}]   ;;  %s2526_s5 = inlined_call_operand.vmem [shape: f32[2,1,8], index: 5, kind: output, shape index: {1}]   ;;  %s2527_s6 = inlined_call_operand.vmem [shape: f32[2,1,8], index: 6, kind: output, shape index: {2}]  }
   0x1 LB: > { %s1821_s22 = sadd.s32 4294967295, %s2204_s21   ;;  %p1825_p0 = scmp.ge.s32.totalorder %s2204_s21, 1  ;;  %s2204_s21 = sphi %s2242_s21, %s17_s21  }
   0x2   : > { %p217_p1 = scmp.lt.s32.totalorder %s2204_s21, 3 }
   0x4   : > { %p218_p2 = pnand %p1825_p0, %p217_p1 }
   0x5   : > { %v1832_v0 = vld [vmem:[%s2524_s3 + $0x8] sm:$0xff] (!%p218_p2)  ;;  %v2256_v1 = vld [vmem:[%s2524_s3 + $0x20] sm:$0xff] (!%p218_p2)  ;;  %vm315_vm0 = vcmask (!%p218_p2), 64512   ;;  %vm317_vm1 = vcmask (!%p218_p2), 58368   ;;  %p2260_p3 = scmp.lt.s32.totalorder (!%p218_p2), %s1821_s22, 1  ;;  %v2206_v2 = vmov (!%p218_p2), 0.0  }
   0x6   : > { %221 = sbr.rel (%p218_p2) target bundleno = 335 (0x14f), region = 36  ;;  %1997 = vmatprep.subr.mxu1 (!%p218_p2), %v1832_v0  ;;  %2053 = vmatprep.subr.mxu0 (!%p218_p2), %v2256_v1  ;;  %316 = vst.msk [vmem:[#allocation2] sm:$0xff] (!%p218_p2), %vm315_vm0, %v2206_v2  ;;  %319 = vst.msk [vmem:[#allocation2 + $0x10] sm:$0xff] (!%p218_p2), %vm315_vm0, %v2206_v2  ;;  %v354_v3 = vld [vmem:[%s2524_s3] sm:$0xff] (!%p218_p2)  ;;  %v1876_v4 = vld [vmem:[%s2524_s3 + $0x28] sm:$0xff] (!%p218_p2)  ;;  %vm1713_vm2 = vcmask (!%p218_p2), 57344  }
   0x7   : > { %318 = vst.msk [vmem:[#allocation2 + $0x8] sm:$0x3] (!%p218_p2), %vm317_vm1, %v2206_v2  ;;  %320 = vst.msk [vmem:[#allocation2 + $0x18] sm:$0x3] (!%p218_p2), %vm317_vm1, %v2206_v2  ;;  %1998 = vmatpush3.msra.mxu1 (!%p218_p2), %v1832_v0  ;;  %2054 = vmatpush3.msra.mxu0 (!%p218_p2), %v2256_v1  ;;  %v1830_v5 = vld [vmem:[%s2522_s1] ss:$0 sm:$0xff] (!%p218_p2) }
   0x8   : > { %321 = vst.msk [vmem:[#allocation2 + $0x20] sm:$0xff] (!%p218_p2), %vm315_vm0, %v2206_v2  ;;  %323 = vst.msk [vmem:[#allocation2 + $0x30] sm:$0xff] (!%p218_p2), %vm315_vm0, %v2206_v2  ;;  %2011 = vmatprep.subr.mxu1 (!%p218_p2), %v354_v3  ;;  %2067 = vmatprep.subr.mxu0 (!%p218_p2), %v1876_v4  ;;  %v1831_v6 = vld [vmem:[%s2523_s2] ss:$0 sm:$0xff] (!%p218_p2)  ;;  %v1885_v43 = vld [vmem:[%s2524_s3 + $0x30] sm:$0xff] (!%p218_p2) }
   0x9   : > { %322 = vst.msk [vmem:[#allocation2 + $0x28] sm:$0x3] (!%p218_p2), %vm317_vm1, %v2206_v2  ;;  %324 = vst.msk [vmem:[#allocation2 + $0x38] sm:$0x3] (!%p218_p2), %vm317_vm1, %v2206_v2  ;;  %v1849_v44 = vld [vmem:[%s2524_s3 + $0x10] sm:$0xff] (!%p218_p2)  ;;  %v1894_v51 = vld [vmem:[%s2524_s3 + $0x38] sm:$0xff] (!%p218_p2) }
   0xa   : > { %325 = vst.msk [vmem:[#allocation2 + $0x40] sm:$0xff] (!%p218_p2), %vm315_vm0, %v2206_v2  ;;  %327 = vst.msk [vmem:[#allocation2 + $0x50] sm:$0xff] (!%p218_p2), %vm315_vm0, %v2206_v2  ;;  %v1858_v60 = vld [vmem:[%s2524_s3 + $0x18] sm:$0xff] (!%p218_p2) }
   0xb   : > { %326 = vst.msk [vmem:[#allocation2 + $0x48] sm:$0x3] (!%p218_p2), %vm317_vm1, %v2206_v2  ;;  %328 = vst.msk [vmem:[#allocation2 + $0x58] sm:$0x3] (!%p218_p2), %vm317_vm1, %v2206_v2 }
   0xc   : > { %329 = vst.msk [vmem:[#allocation2 + $0x60] sm:$0xff] (!%p218_p2), %vm315_vm0, %v2206_v2  ;;  %331 = vst.msk [vmem:[#allocation2 + $0x70] sm:$0xff] (!%p218_p2), %vm315_vm0, %v2206_v2 }
   0xd   : > { %330 = vst.msk [vmem:[#allocation2 + $0x68] sm:$0x3] %vm317_vm1, %v2206_v2  ;;  %332 = vst.msk [vmem:[#allocation2 + $0x78] sm:$0x3] %vm317_vm1, %v2206_v2  ;;  %s2530_s22 = smov (!%p2260_p3, %s1821_s22), 1  ;;  %v346_v54 = vld [vmem:[#allocation2] sm:$0xff] }
   0xe   : > { %333 = vst.msk [vmem:[#allocation2 + $0x80] sm:$0xff] %vm315_vm0, %v2206_v2  ;;  %335 = vst.msk [vmem:[#allocation2 + $0x90] sm:$0xff] %vm315_vm0, %v2206_v2  ;;  %s1914_s8 = sshll.u32 %s2530_s22, 6  ;;  %v355_v16 = vld [vmem:[#allocation2 + $0x1] sm:$0xff]  ;;  %s265_s9 = scalar_lea.vmem %s2526_s5, %s2530_s22 }
   0xf   : > { %334 = vst.msk [vmem:[#allocation2 + $0x88] sm:$0x3] %vm317_vm1, %v2206_v2  ;;  %336 = vst.msk [vmem:[#allocation2 + $0x98] sm:$0x3] %vm317_vm1, %v2206_v2  ;;  %s257_s13 = scalar_lea.vmem %s2521_s0, %s1914_s8  ;;  %1999 = vmatprep.mubr.msk.f32.mxu1 %vm315_vm0, %v355_v16  ;;  %s2476_s30 = scalar_lea.vmem %s2525_s4, %s1914_s8 }
  0x10   : > { %v269_v7 = vld [vmem:[%s257_s13] sm:$0xff]  ;;  %v270_v8 = vld [vmem:[%s257_s13 + $0x8] sm:$0xff]  ;;  %v271_v9 = vld [vmem:[%s257_s13 + $0x10] sm:$0xff]  ;;  %s268_s12 = scalar_lea.vmem %s2527_s6, %s2530_s22 }
  0x11   : > { %v284_v10 = vmul.f32 %v1830_v5, %v269_v7  ;;  %v285_v11 = vmul.f32 %v1830_v5, %v270_v8  ;;  %v286_v12 = vmul.f32 %v1830_v5, %v271_v9  ;;  %v272_v13 = vld [vmem:[%s257_s13 + $0x18] sm:$0xff]  ;;  %v273_v14 = vld [vmem:[%s257_s13 + $0x20] sm:$0xff]  ;;  %v274_v15 = vld [vmem:[%s257_s13 + $0x28] sm:$0xff] }
  0x12   : > { %v287_v17 = vmul.f32 %v1830_v5, %v272_v13  ;;  %v288_v18 = vmul.f32 %v1830_v5, %v273_v14  ;;  %v289_v19 = vmul.f32 %v1830_v5, %v274_v15  ;;  %v275_v20 = vld [vmem:[%s257_s13 + $0x30] sm:$0xff]  ;;  %v276_v25 = vld [vmem:[%s257_s13 + $0x38] sm:$0xff] }
  0x13   : > { %v299_v21 = vadd.f32 %v1831_v6, %v284_v10  ;;  %v300_v22 = vadd.f32 %v1831_v6, %v285_v11  ;;  %v301_v23 = vadd.f32 %v1831_v6, %v286_v12  ;;  %v290_v24 = vmul.f32 %v1830_v5, %v275_v20 }
  0x14   : > { %v302_v26 = vadd.f32 %v1831_v6, %v287_v17  ;;  %v303_v27 = vadd.f32 %v1831_v6, %v288_v18  ;;  %v304_v28 = vadd.f32 %v1831_v6, %v289_v19  ;;  %v291_v29 = vmul.f32 %v1830_v5, %v276_v25  ;;  %v623_v5 = vld [vmem:[#allocation2 + $0x2] sm:$0xff] }
  0x15   : > { %v307_v30 = vmax.f32 %v299_v21, 0.0  ;;  %v308_v31 = vmax.f32 %v300_v22, 0.0  ;;  %v309_v32 = vmax.f32 %v301_v23, 0.0  ;;  %v305_v33 = vadd.f32 %v1831_v6, %v290_v24  ;;  %v1219_v7 = vld [vmem:[#allocation2 + $0x90] sm:$0xff] }
  0x16   : > { %v310_v34 = vmax.f32 %v302_v26, 0.0  ;;  %v311_v35 = vmax.f32 %v303_v27, 0.0  ;;  %v312_v36 = vmax.f32 %v304_v28, 0.0  ;;  %v306_v37 = vadd.f32 %v1831_v6, %v291_v29  ;;  %v1366_v9 = vld [vmem:[#allocation2 + $0x91] sm:$0xff] }
  0x17   : > { %338 = vst.msk [vmem:[#allocation2 + $0x11] sm:$0xff] %vm315_vm0, %v307_v30  ;;  %339 = vst.msk [vmem:[#allocation2 + $0x21] sm:$0xff] %vm315_vm0, %v308_v31  ;;  %v313_v38 = vmax.f32 %v305_v33, 0.0 }
  0x18   : > { %340 = vst.msk [vmem:[#allocation2 + $0x31] sm:$0xff] %vm315_vm0, %v309_v32  ;;  %341 = vst.msk [vmem:[#allocation2 + $0x41] sm:$0xff] %vm315_vm0, %v310_v34  ;;  %v314_v39 = vmax.f32 %v306_v37, 0.0 }
  0x19   : > { %342 = vst.msk [vmem:[#allocation2 + $0x51] sm:$0xff] %vm315_vm0, %v311_v35  ;;  %343 = vst.msk [vmem:[#allocation2 + $0x61] sm:$0xff] %vm315_vm0, %v312_v36 }
  0x1a   : > { %344 = vst.msk [vmem:[#allocation2 + $0x71] sm:$0xff] %vm315_vm0, %v313_v38  ;;  %345 = vst.msk [vmem:[#allocation2 + $0x81] sm:$0xff] %vm315_vm0, %v314_v39 }
  0x1e   : > { %v356_v40 = vld [vmem:[#allocation2 + $0x11] sm:$0xff]  ;;  %v2319_v41 = vld [vmem:[#allocation2 + $0x21] sm:$0xff] }
  0x1f   : > { %2000 = vmatmul.mubr.msk.f32.vlgmr.msra.gmra.mrb[0].mxu1 %vm315_vm0, %v356_v40  ;;  %2055 = vmatprep.mubr.msk.f32.mxu0 %vm315_vm0, %v356_v40  ;;  %v2323_v42 = vld [vmem:[#allocation2 + $0x31] sm:$0xff]  ;;  %v2335_v45 = vld [vmem:[#allocation2 + $0x41] sm:$0xff] }
  0x20   : > { %2012 = vmatpush3.msra.mxu1 %v354_v3  ;;  %2056 = vmatmul.mubr.msk.f32.vlgmr.msra.gmra.mrb[0].mxu0 %vm315_vm0, %v2319_v41  ;;  %v1064_v46 = vld [vmem:[#allocation2 + $0x12] sm:$0xff]  ;;  %v2348_v48 = vld [vmem:[#allocation2 + $0x22] sm:$0xff] }
  0x21   : > { %2068 = vmatpush3.msra.mxu0 %v1876_v4  ;;  %2002 = vmatprep.mubr.msk.f32.mxu1 %vm315_vm0, %v2319_v41  ;;  %v2345_v47 = vld [vmem:[#allocation2 + $0x51] sm:$0xff]  ;;  %v2350_v49 = vld [vmem:[#allocation2 + $0x61] sm:$0xff] }
  0x22   : > { %2058 = vmatprep.mubr.msk.f32.mxu0 %vm315_vm0, %v2323_v42  ;;  %2081 = vmatprep.subr.mxu0 %v1885_v43  ;;  %v2352_v50 = vld [vmem:[#allocation2 + $0x32] sm:$0xff]  ;;  %v2367_v53 = vld [vmem:[#allocation2 + $0x42] sm:$0xff] }
  0x23   : > { %2003 = vmatmul.mubr.msk.f32.gmra.mrb[2].mxu1 %vm315_vm0, %v2323_v42  ;;  %2025 = vmatprep.subr.mxu1 %v1849_v44  ;;  %v2363_v52 = vld [vmem:[#allocation2 + $0x71] sm:$0xff]  ;;  %v2378_v57 = vld [vmem:[#allocation2 + $0x62] sm:$0xff] }
  0x24   : > { %2059 = vmatmul.mubr.msk.f32.gmra.mrb[2].mxu0 %vm315_vm0, %v2335_v45  ;;  %2005 = vmatprep.mubr.msk.f32.mxu1 %vm315_vm0, %v2335_v45  ;;  %v2369_v55 = vld [vmem:[#allocation2 + $0x52] sm:$0xff]  ;;  %v348_v58 = vld [vmem:[#allocation2 + $0x20] sm:$0xff] }
  0x25   : > { %2069 = vmatprep.mubr.msk.f32.mxu0 %vm315_vm0, %v1064_v46  ;;  %v347_v56 = vld [vmem:[#allocation2 + $0x10] sm:$0xff]  ;;  %v2391_v62 = vld [vmem:[#allocation2 + $0x82] sm:$0xff] }
  0x26   : > { %v2380_v59 = vld [vmem:[#allocation2 + $0x72] sm:$0xff]  ;;  %v350_v63 = vld [vmem:[#allocation2 + $0x40] sm:$0xff] }
  0x27   : > { %2006 = vmatmul.mubr.msk.f32.gmra.mrb[4].mxu1 %vm315_vm0, %v2345_v47  ;;  %v349_v61 = vld [vmem:[#allocation2 + $0x30] sm:$0xff]  ;;  %v352_v2 = vld [vmem:[#allocation2 + $0x60] sm:$0xff] }
  0x28   : > { %2070 = vmatmul.mubr.msk.f32.vlgmr.msra.gmra.mrb[0].mxu0 %vm315_vm0, %v2348_v48  ;;  %2008 = vmatprep.mubr.msk.f32.mxu1 %vm315_vm0, %v2350_v49  ;;  %v351_v0 = vld [vmem:[#allocation2 + $0x50] sm:$0xff]  ;;  %v1903_v3 = vld [vmem:[%s2524_s3 + $0x40] sm:$0xff] }
  0x29   : > { %2082 = vmatpush3.msra.mxu0 %v1885_v43  ;;  %2072 = vmatprep.mubr.msk.f32.mxu0 %vm315_vm0, %v2352_v50  ;;  %v353_v4 = vld [vmem:[#allocation2 + $0x70] sm:$0xff]  ;;  %v1218_v6 = vld [vmem:[#allocation2 + $0x80] sm:$0xff] }
  0x2a   : > { %2095 = vmatprep.subr.mxu0 %v1894_v51  ;;  %v1365_v8 = vld [vmem:[#allocation2 + $0x81] sm:$0xff] }
  0x2b   : > { %2009 = vmatmul.mubr.msk.f32.gmra.mrb[6].mxu1 %vm315_vm0, %v2363_v52 }
  0x2c   : > { %2073 = vmatmul.mubr.msk.f32.gmra.mrb[2].mxu0 %vm315_vm0, %v2367_v53  ;;  %2013 = vmatprep.mubr.msk.f32.mxu1 %vm315_vm0, %v346_v54 }
  0x2d   : > { %2075 = vmatprep.mubr.msk.f32.mxu0 %vm315_vm0, %v2369_v55 }
  0x2f   : > { %2014 = vmatmul.mubr.msk.f32.vlgmr.msra.gmra.mrb[0].mxu1 %vm315_vm0, %v347_v56 }
  0x30   : > { %2026 = vmatpush3.msra.mxu1 %v1849_v44  ;;  %2076 = vmatmul.mubr.msk.f32.gmra.mrb[4].mxu0 %vm315_vm0, %v2378_v57 }
  0x31   : > { %2016 = vmatprep.mubr.msk.f32.mxu1 %vm315_vm0, %v348_v58  ;;  %2078 = vmatprep.mubr.msk.f32.mxu0 %vm315_vm0, %v2380_v59 }
  0x32   : > { %2039 = vmatprep.subr.mxu1 %v1858_v60 }
  0x33   : > { %2017 = vmatmul.mubr.msk.f32.gmra.mrb[2].mxu1 %vm315_vm0, %v349_v61 }
  0x34   : > { %2079 = vmatmul.mubr.msk.f32.gmra.mrb[6].mxu0 %vm315_vm0, %v2391_v62  ;;  %2019 = vmatprep.mubr.msk.f32.mxu1 %vm315_vm0, %v350_v63 }
  0x35   : > { %2083 = vmatprep.mubr.msk.f32.mxu0 %vm315_vm0, %v348_v58 }
  0x37   : > { %2020 = vmatmul.mubr.msk.f32.gmra.mrb[4].mxu1 %vm315_vm0, %v351_v0 }
  0x38   : > { %2084 = vmatmul.mubr.msk.f32.vlgmr.msra.gmra.mrb[0].mxu0 %vm315_vm0, %v349_v61  ;;  %2022 = vmatprep.mubr.msk.f32.mxu1 %vm315_vm0, %v352_v2 }
  0x39   : > { %2096 = vmatpush3.msra.mxu0 %v1894_v51  ;;  %2086 = vmatprep.mubr.msk.f32.mxu0 %vm315_vm0, %v350_v63 }
  0x3a   : > { %2109 = vmatprep.subr.mxu0 %v1903_v3 }
  0x3b   : > { %2023 = vmatmul.mubr.msk.f32.gmra.mrb[6].mxu1 %vm315_vm0, %v353_v4 }
  0x3c   : > { %2087 = vmatmul.mubr.msk.f32.gmra.mrb[2].mxu0 %vm315_vm0, %v351_v0  ;;  %2027 = vmatprep.mubr.msk.f32.mxu1 %vm315_vm0, %v623_v5 }
  0x3d   : > { %2089 = vmatprep.mubr.msk.f32.mxu0 %vm315_vm0, %v352_v2 }
  0x3f   : > { %2028 = vmatmul.mubr.msk.f32.vlgmr.msra.gmra.mrb[0].mxu1 %vm315_vm0, %v1064_v46 }
  0x40   : > { %2040 = vmatpush3.msra.mxu1 %v1858_v60  ;;  %2090 = vmatmul.mubr.msk.f32.gmra.mrb[4].mxu0 %vm315_vm0, %v353_v4 }
  0x41   : > { %2030 = vmatprep.mubr.msk.f32.mxu1 %vm315_vm0, %v2348_v48  ;;  %2092 = vmatprep.mubr.msk.f32.mxu0 %vm315_vm0, %v1218_v6 }
  0x42   : > { %2123 = vmatprep.subr.mxu1 %v2256_v1 }
  0x43   : > { %2031 = vmatmul.mubr.msk.f32.gmra.mrb[2].mxu1 %vm315_vm0, %v2352_v50 }
  0x44   : > { %2093 = vmatmul.mubr.msk.f32.gmra.mrb[6].mxu0 %vm315_vm0, %v1219_v7  ;;  %2033 = vmatprep.mubr.msk.f32.mxu1 %vm315_vm0, %v2367_v53 }
  0x45   : > { %2097 = vmatprep.mubr.msk.f32.mxu0 %vm315_vm0, %v2319_v41 }
  0x47   : > { %2034 = vmatmul.mubr.msk.f32.gmra.mrb[4].mxu1 %vm315_vm0, %v2369_v55 }
  0x48   : > { %2098 = vmatmul.mubr.msk.f32.vlgmr.msra.gmra.mrb[0].mxu0 %vm315_vm0, %v2323_v42  ;;  %2036 = vmatprep.mubr.msk.f32.mxu1 %vm315_vm0, %v2378_v57 }
  0x49   : > { %2110 = vmatpush3.msra.mxu0 %v1903_v3  ;;  %2100 = vmatprep.mubr.msk.f32.mxu0 %vm315_vm0, %v2335_v45 }
  0x4b   : > { %2037 = vmatmul.mubr.msk.f32.gmra.mrb[6].mxu1 %vm315_vm0, %v2380_v59 }
  0x4c   : > { %2101 = vmatmul.mubr.msk.f32.gmra.mrb[2].mxu0 %vm315_vm0, %v2345_v47  ;;  %2041 = vmatprep.mubr.msk.f32.mxu1 %vm315_vm0, %v347_v56 }
  0x4d   : > { %2103 = vmatprep.mubr.msk.f32.mxu0 %vm315_vm0, %v2350_v49 }
  0x4f   : > { %2042 = vmatmul.mubr.msk.f32.vlgmr.msra.gmra.mrb[0].mxu1 %vm315_vm0, %v348_v58 }
  0x50   : > { %2124 = vmatpush3.msra.mxu1 %v2256_v1  ;;  %2104 = vmatmul.mubr.msk.f32.gmra.mrb[4].mxu0 %vm315_vm0, %v2363_v52  ;;  %v1513_v1 = vld [vmem:[#allocation2 + $0x92] sm:$0xff] }
  0x51   : > { %2044 = vmatprep.mubr.msk.f32.mxu1 %vm315_vm0, %v349_v61  ;;  %2106 = vmatprep.mubr.msk.f32.mxu0 %vm315_vm0, %v1365_v8 }
  0x53   : > { %2045 = vmatmul.mubr.msk.f32.gmra.mrb[2].mxu1 %vm315_vm0, %v350_v63 }
  0x54   : > { %2107 = vmatmul.mubr.msk.f32.gmra.mrb[6].mxu0 %vm315_vm0, %v1366_v9  ;;  %2047 = vmatprep.mubr.msk.f32.mxu1 %vm315_vm0, %v351_v0 }
  0x55   : > { %2111 = vmatprep.mubr.msk.f32.mxu0 %vm315_vm0, %v2348_v48 }
  0x57   : > { %2048 = vmatmul.mubr.msk.f32.gmra.mrb[4].mxu1 %vm315_vm0, %v352_v2 }
  0x58   : > { %2112 = vmatmul.mubr.msk.f32.vlgmr.msra.gmra.mrb[0].mxu0 %vm315_vm0, %v2352_v50  ;;  %2050 = vmatprep.mubr.msk.f32.mxu1 %vm315_vm0, %v353_v4 }
  0x59   : > { %2114 = vmatprep.mubr.msk.f32.mxu0 %vm315_vm0, %v2367_v53 }
  0x5b   : > { %2051 = vmatmul.mubr.msk.f32.gmra.mrb[6].mxu1 %vm315_vm0, %v1218_v6 }
  0x5c   : > { %2115 = vmatmul.mubr.msk.f32.gmra.mrb[2].mxu0 %vm315_vm0, %v2369_v55  ;;  %2061 = vmatprep.mubr.msk.f32.mxu1 %vm315_vm0, %v2345_v47 }
  0x5d   : > { %2117 = vmatprep.mubr.msk.f32.mxu0 %vm315_vm0, %v2378_v57 }
  0x5f   : > { %2062 = vmatmul.mubr.msk.f32.vlgmr.msra.gmra.mrb[4].mxu1 %vm315_vm0, %v2350_v49 }
  0x60   : > { %2118 = vmatmul.mubr.msk.f32.gmra.mrb[4].mxu0 %vm315_vm0, %v2380_v59  ;;  %2064 = vmatprep.mubr.msk.f32.mxu1 %vm315_vm0, %v2363_v52 }
  0x61   : > { %2120 = vmatprep.mubr.msk.f32.mxu0 %vm315_vm0, %v2391_v62 }
  0x63   : > { %2065 = vmatmul.mubr.msk.f32.gmra.mrb[6].mxu1 %vm315_vm0, %v1365_v8 }
  0x64   : > { %2121 = vmatmul.mubr.msk.f32.gmra.mrb[6].mxu0 %vm315_vm0, %v1513_v1 }
 0x122   : > { %v2043_v10 = vpop.f32.mrb[0].mxu1 }
 0x123   : > { %v870_v11 = vpop.f32.mrb[1].mxu1 }
 0x126   : > { %v2046_v12 = vpop.f32.mrb[2].mxu1 }
 0x127   : > { %v880_v13 = vpop.f32.mrb[3].mxu1 }
 0x12b   : > { %v2113_v14 = vpop.f32.mrb[0].mxu0 }
 0x12c   : > { %v2125_v15 = vadd.f32 %v2113_v14, %v2043_v10  ;;  %v1606_v16 = vpop.f32.mrb[1].mxu0 }
 0x12d   : > { %v2126_v17 = vadd.f32 %v1606_v16, %v870_v11 }
 0x12e   : > { %1654 = vst.msk [vmem:[%s2476_s30 + $0x8] sm:$0xff] %vm315_vm0, %v2125_v15  ;;  %v1662_v18 = vsel %vm315_vm0, %v2125_v15, 0.0  ;;  %v1684_v19 = vmul.f32 %v2125_v15, %v2125_v15 }
 0x12f   : > { %1653 = vst.msk [vmem:[%s2476_s30] sm:$0xff] %vm315_vm0, %v2126_v17  ;;  %v1661_v20 = vsel %vm315_vm0, %v2126_v17, 0.0  ;;  %v1683_v21 = vmul.f32 %v2126_v17, %v2126_v17  ;;  %v2116_v22 = vpop.f32.mrb[2].mxu0 }
 0x130   : > { %v1692_v23 = vsel %vm315_vm0, %v1684_v19, 0.0  ;;  %v1663_v24 = vadd.f32 %v1662_v18, %v1661_v20  ;;  %v2127_v25 = vadd.f32 %v2116_v22, %v2046_v12  ;;  %v1616_v26 = vpop.f32.mrb[3].mxu0 }
 0x131   : > { %v1691_v27 = vsel %vm315_vm0, %v1683_v21, 0.0  ;;  %v2128_v28 = vadd.f32 %v1616_v26, %v880_v13 }
 0x132   : > { %v1693_v29 = vadd.f32 %v1692_v23, %v1691_v27  ;;  %1656 = vst.msk [vmem:[%s2476_s30 + $0x18] sm:$0xff] %vm315_vm0, %v2127_v25  ;;  %v2063_v30 = vpop.f32.mrb[4].mxu1  ;;  %v1686_v31 = vmul.f32 %v2127_v25, %v2127_v25  ;;  %v1666_v39 = vsel %vm315_vm0, %v2127_v25, 0.0 }
 0x133   : > { %1655 = vst.msk [vmem:[%s2476_s30 + $0x10] sm:$0xff] %vm315_vm0, %v2128_v28  ;;  %v1664_v32 = vsel %vm315_vm0, %v2128_v28, 0.0  ;;  %v1685_v33 = vmul.f32 %v2128_v28, %v2128_v28  ;;  %v1037_v34 = vpop.f32.mrb[5].mxu1  ;;  %v2119_v35 = vpop.f32.mrb[4].mxu0 }
 0x134   : > { %v1665_v36 = vadd.f32 %v1664_v32, %v1663_v24  ;;  %v2129_v37 = vadd.f32 %v2119_v35, %v2063_v30  ;;  %v1626_v38 = vpop.f32.mrb[5].mxu0  ;;  %v1696_v45 = vsel %vm315_vm0, %v1686_v31, 0.0 }
 0x135   : > { %v1694_v40 = vsel %vm315_vm0, %v1685_v33, 0.0  ;;  %v2130_v41 = vadd.f32 %v1626_v38, %v1037_v34 }
 0x136   : > { %v1695_v42 = vadd.f32 %v1694_v40, %v1693_v29  ;;  %1658 = vst.msk [vmem:[%s2476_s30 + $0x28] sm:$0xff] %vm315_vm0, %v2129_v37  ;;  %v1667_v43 = vadd.f32 %v1666_v39, %v1665_v36  ;;  %v2066_v44 = vpop.f32.mrb[6].mxu1  ;;  %v1688_v46 = vmul.f32 %v2129_v37, %v2129_v37  ;;  %v1670_v55 = vsel %vm315_vm0, %v2129_v37, 0.0 }
 0x137   : > { %1657 = vst.msk [vmem:[%s2476_s30 + $0x20] sm:$0xff] %vm315_vm0, %v2130_v41  ;;  %v1668_v47 = vsel %vm315_vm0, %v2130_v41, 0.0  ;;  %v1687_v48 = vmul.f32 %v2130_v41, %v2130_v41  ;;  %v1047_v49 = vpop.f32.mrb[7].mxu1  ;;  %v2122_v50 = vpop.f32.mrb[6].mxu0 }
 0x138   : > { %v1669_v51 = vadd.f32 %v1668_v47, %v1667_v43  ;;  %v1697_v52 = vadd.f32 %v1696_v45, %v1695_v42  ;;  %v2131_v53 = vadd.f32 %v2122_v50, %v2066_v44  ;;  %v1636_v54 = vpop.f32.mrb[7].mxu0  ;;  %v1700_v60 = vsel %vm315_vm0, %v1688_v46, 0.0 }
 0x139   : > { %v1698_v56 = vsel %vm315_vm0, %v1687_v48, 0.0  ;;  %v2132_v57 = vadd.f32 %v1636_v54, %v1047_v49 }
 0x13a   : > { %v1699_v58 = vadd.f32 %v1698_v56, %v1697_v52  ;;  %1660 = vst.msk [vmem:[%s2476_s30 + $0x38] sm:$0xff] %vm315_vm0, %v2131_v53  ;;  %v1671_v59 = vadd.f32 %v1670_v55, %v1669_v51  ;;  %v1690_v61 = vmul.f32 %v2131_v53, %v2131_v53  ;;  %v1674_v3 = vsel %vm315_vm0, %v2131_v53, 0.0 }
 0x13b   : > { %1659 = vst.msk [vmem:[%s2476_s30 + $0x30] sm:$0xff] %vm315_vm0, %v2132_v57  ;;  %v1672_v62 = vsel %vm315_vm0, %v2132_v57, 0.0  ;;  %v1689_v63 = vmul.f32 %v2132_v57, %v2132_v57 }
 0x13c   : > { %v1673_v0 = vadd.f32 %v1672_v62, %v1671_v59  ;;  %v1701_v2 = vadd.f32 %v1700_v60, %v1699_v58  ;;  %v1704_v7 = vsel %vm315_vm0, %v1690_v61, 0.0 }
 0x13d   : > { %v1702_v4 = vsel %vm315_vm0, %v1689_v63, 0.0 }
 0x13e   : > { %v1675_v5 = vadd.f32 %v1674_v3, %v1673_v0  ;;  %v1703_v6 = vadd.f32 %v1702_v4, %v1701_v2 }
 0x140   : > { %v1676_v8 = vrot.slane %v1675_v5, 4  ;;  %v1705_v9 = vadd.f32 %v1704_v7, %v1703_v6 }
 0x142   : > { %v1677_v1 = vadd.f32 %v1676_v8, %v1675_v5  ;;  %v1706_v10 = vrot.slane %v1705_v9, 4 }
 0x144   : > { %v1678_v11 = vrot.slane %v1677_v1, 2  ;;  %v1707_v12 = vadd.f32 %v1706_v10, %v1705_v9 }
 0x146   : > { %v1679_v13 = vadd.f32 %v1678_v11, %v1677_v1  ;;  %v1708_v14 = vrot.slane %v1707_v12, 2 }
 0x148   : > { %v1680_v15 = vrot.slane %v1679_v13, 1  ;;  %v1709_v16 = vadd.f32 %v1708_v14, %v1707_v12 }
 0x14a   : > { %v1681_v17 = vadd.f32 %v1680_v15, %v1679_v13  ;;  %v1710_v18 = vrot.slane %v1709_v16, 1 }
 0x14c   : > { %v1711_v19 = vadd.f32 %v1710_v18, %v1709_v16  ;;  %1714 = vst.msk [vmem:[%s265_s9] sm:$0x1] %vm1713_vm2, %v1681_v17 }
 0x14e   : > { %1715 = vst.msk [vmem:[%s268_s12] sm:$0x1] %vm1713_vm2, %v1711_v19 }
 0x14f PF: > { %s17_s21 = sadd.s32 1, %s2204_s21  }
 0x150   : > { %p14_p4 = scmp.ge.s32.totalorder %s17_s21, 4  }
 0x152   :  { %16 = sbr.rel (!%p14_p4) target bundleno = 1 (0x1), region = 100 }

</bundles_post_ra>
